<compile_context>
chip_gen: v7x
topology: tpu7x:2x2x1
jax: 0.10.0
libtpu: 0.0.40
codegen_flags: <defaults>
</compile_context>

<pallas_src>
import math
import functools

import jax
import jax.numpy as jnp
from jax import lax
from jax.experimental import pallas as pl
from jax.experimental.pallas import tpu as pltpu


# ----------------------------------------------------------------------------
# In-kernel helpers (operate on VMEM-resident tiles)
# ----------------------------------------------------------------------------
def _mha(q_src, kv_src, wq, wkv, wo, masks, num_heads, bb, sq, skv):
    """Multi-head attention.

    q_src:  (bb*sq,  D)   queries source (full batch block, flattened rows)
    kv_src: (bb*skv, D)   keys/values source
    wq:     (D, D)        query projection
    wkv:    (D, 2D)       [Wk | Wv] fused projection
    wo:     (D, D)        output projection
    masks:  None or list of bb boolean (sq, skv) masks
    """
    d = q_src.shape[-1]
    dh = d // num_heads
    scale = 1.0 / math.sqrt(dh)

    # Full-batch, full-width projections: two big MXU matmuls.
    q = jnp.dot(q_src, wq, preferred_element_type=jnp.float32)       # (bb*sq,  D)
    kv = jnp.dot(kv_src, wkv, preferred_element_type=jnp.float32)    # (bb*skv, 2D)

    rows = []
    for bi in range(bb):                       # static unroll over batch block
        qb = q[bi * sq:(bi + 1) * sq, :]
        kb = kv[bi * skv:(bi + 1) * skv, :d]
        vb = kv[bi * skv:(bi + 1) * skv, d:]
        mask = masks[bi] if masks is not None else None
        heads = []
        for h in range(num_heads):             # static unroll; tiny per-head ops
            lo, hi = h * dh, (h + 1) * dh
            s = lax.dot_general(qb[:, lo:hi], kb[:, lo:hi],
                                (((1,), (1,)), ((), ())),
                                preferred_element_type=jnp.float32) * scale
            if mask is not None:
                s = jnp.where(mask, s, -1e6)    # d2l masked_softmax fill value
            s = s - jnp.max(s, axis=-1, keepdims=True)
            p = jnp.exp(s)
            p = p / jnp.sum(p, axis=-1, keepdims=True)
            heads.append(jnp.dot(p, vb[:, lo:hi], preferred_element_type=jnp.float32))
        rows.append(jnp.concatenate(heads, axis=-1))        # (sq, D)

    o = rows[0] if bb == 1 else jnp.concatenate(rows, axis=0)   # (bb*sq, D)
    return jnp.dot(o, wo, preferred_element_type=jnp.float32)


def _add_norm(x, y, gamma, beta):
    """LayerNorm(y + x) over the last dim (biased variance, eps=1e-5, like nn.LayerNorm)."""
    z = x + y
    mean = jnp.mean(z, axis=-1, keepdims=True)
    c = z - mean
    var = jnp.mean(c * c, axis=-1, keepdims=True)
    return c * lax.rsqrt(var + 1e-5) * gamma + beta


# ----------------------------------------------------------------------------
# Fused decoder-block kernel: one grid step == one batch block (bb elements)
# ----------------------------------------------------------------------------
def _decoder_block_kernel(enc_valid_ref,                     # scalar prefetch (SMEM): (B,)
                          x_ref, kv_ref, enc_ref,
                          wq1_ref, wkv1_ref, wo1_ref,
                          wq2_ref, wkv2_ref, wo2_ref,
                          w1_ref, b1_ref, w2_ref, b2_ref,
                          g1_ref, be1_ref, g2_ref, be2_ref, g3_ref, be3_ref,
                          out_ref,
                          *, num_heads, bb, t, tk, se, causal, use_enc_mask):
    x = x_ref[...]        # (bb*t,  D)
    kv = kv_ref[...]      # (bb*tk, D)
    enc = enc_ref[...]    # (bb*se, D)

    # Self-attention mask. Training: dec_valid_lens = arange(1, T+1) -> col <= row.
    # Built once per grid step and shared across the whole batch block.
    if causal:
        row = lax.broadcasted_iota(jnp.int32, (t, tk), 0)
        col = lax.broadcasted_iota(jnp.int32, (t, tk), 1)
        masks1 = [col <= row] * bb
    else:
        masks1 = None

    # Encoder-decoder mask from per-batch enc_valid_lens (int32 scalars in SMEM).
    if use_enc_mask:
        col_e = lax.broadcasted_iota(jnp.int32, (t, se), 1)
        base = pl.program_id(0) * bb
        masks2 = [col_e < enc_valid_ref[base + bi] for bi in range(bb)]
    else:
        masks2 = None

    # 1) masked self-attention + AddNorm
    x2 = _mha(x, kv, wq1_ref[...], wkv1_ref[...], wo1_ref[...],
              masks1, num_heads, bb, t, tk)
    y = _add_norm(x, x2, g1_ref[...], be1_ref[...])

    # 2) encoder-decoder attention + AddNorm
    y2 = _mha(y, enc, wq2_ref[...], wkv2_ref[...], wo2_ref[...],
              masks2, num_heads, bb, t, se)
    z = _add_norm(y, y2, g2_ref[...], be2_ref[...])

    # 3) position-wise FFN + AddNorm
    h = jnp.dot(z, w1_ref[...], preferred_element_type=jnp.float32) + b1_ref[...]
    h = jnp.maximum(h, 0.0)
    f = jnp.dot(h, w2_ref[...], preferred_element_type=jnp.float32) + b2_ref[...]
    out_ref[...] = _add_norm(z, f, g3_ref[...], be3_ref[...])


# ----------------------------------------------------------------------------
# DecoderBlock forward (wrapper handles kv-cache bookkeeping + flat reshapes)
# ----------------------------------------------------------------------------
def decoder_block_forward(params, X, state, block_idx=0, training=True,
                          num_batch_blocks=1):
    enc_outputs, enc_valid_lens, kv_cache = state
    B, T, D = X.shape

    if kv_cache[block_idx] is None:
        key_values = X
    else:
        key_values = jnp.concatenate([kv_cache[block_idx], X], axis=1)
    kv_cache = list(kv_cache)
    kv_cache[block_idx] = key_values
    Tk = key_values.shape[1]
    Se = enc_outputs.shape[1]
    Fh = params["w_ffn1"].shape[1]

    causal = bool(training)
    if causal and Tk != T:
        raise ValueError("d2l training mode implies key_values == X (no kv cache)")

    use_enc_mask = enc_valid_lens is not None
    if use_enc_mask:
        enc_valid = enc_valid_lens.astype(jnp.int32).reshape(B)
    else:
        enc_valid = jnp.zeros((B,), jnp.int32)     # prefetched but unused

    # Batch blocking: default 1 grid step (fuse whole batch, best on v5e/v6e);
    # set num_batch_blocks=2 to shard across the two TensorCores on v7x.
    if num_batch_blocks < 1 or B % num_batch_blocks != 0:
        num_batch_blocks = 1
    bb = B // num_batch_blocks

    # Free (metadata-only) wrapper reshapes: kernel sees 2-D, lane-aligned rows.
    x2d = X.reshape(B * T, D)
    kv2d = key_values.reshape(B * Tk, D)
    enc2d = enc_outputs.reshape(B * Se, D)
    # Fused K|V projection weights (tiny one-time concat).
    wkv1 = jnp.concatenate([params["wk1"], params["wv1"]], axis=1)   # (D, 2D)
    wkv2 = jnp.concatenate([params["wk2"], params["wv2"]], axis=1)   # (D, 2D)

    kernel = functools.partial(_decoder_block_kernel,
                               num_heads=params["num_heads"],
                               bb=bb, t=T, tk=Tk, se=Se,
                               causal=causal, use_enc_mask=use_enc_mask)

    act_spec = lambda rows: pl.BlockSpec((rows, D), lambda g, ev: (g, 0))
    full2d = lambda r, c: pl.BlockSpec((r, c), lambda g, ev: (0, 0))

    grid_spec = pltpu.PrefetchScalarGridSpec(
        num_scalar_prefetch=1,
        grid=(num_batch_blocks,),
        in_specs=[
            act_spec(bb * T),             # X          (flattened rows)
            act_spec(bb * Tk),            # key_values (flattened rows)
            act_spec(bb * Se),            # enc_outputs(flattened rows)
            full2d(D, D), full2d(D, 2 * D), full2d(D, D),   # attn1 Wq, [Wk|Wv], Wo
            full2d(D, D), full2d(D, 2 * D), full2d(D, D),   # attn2 Wq, [Wk|Wv], Wo
            full2d(D, Fh), full2d(1, Fh),                   # FFN dense1 W, b
            full2d(Fh, D), full2d(1, D),                    # FFN dense2 W, b
            full2d(1, D), full2d(1, D),                     # ln1 gamma/beta
            full2d(1, D), full2d(1, D),                     # ln2 gamma/beta
            full2d(1, D), full2d(1, D),                     # ln3 gamma/beta
        ],
        out_specs=pl.BlockSpec((bb * T, D), lambda g, ev: (g, 0)),
    )

    out2d = pl.pallas_call(
        kernel,
        out_shape=jax.ShapeDtypeStruct((B * T, D), jnp.float32),
        grid_spec=grid_spec,
        compiler_params=pltpu.CompilerParams(dimension_semantics=("parallel",)),
    )(enc_valid, x2d, kv2d, enc2d,
      params["wq1"], wkv1, params["wo1"],
      params["wq2"], wkv2, params["wo2"],
      params["w_ffn1"], params["b_ffn1"], params["w_ffn2"], params["b_ffn2"],
      params["ln1_g"], params["ln1_b"], params["ln2_g"], params["ln2_b"],
      params["ln3_g"], params["ln3_b"])

    out = out2d.reshape(B, T, D)
    return out, (enc_outputs, enc_valid_lens, kv_cache)


# ----------------------------------------------------------------------------
# Pure-JAX reference (for correctness check)
# ----------------------------------------------------------------------------
def _ref_mha(x, kv, valid_2d, wq, wk, wv, wo, num_heads):
    B, Sq, D = x.shape
    Skv = kv.shape[1]
    dh = D // num_heads
    q = x @ wq
    k = kv @ wk
    v = kv @ wv
    split = lambda t, S: t.reshape(B, S, num_heads, dh).transpose(0, 2, 1, 3)
    qh, kh, vh = split(q, Sq), split(k, Skv), split(v, Skv)
    s = jnp.einsum("bhqd,bhkd->bhqk", qh, kh) / math.sqrt(dh)
    col = jnp.arange(Skv)
    mask = col[None, None, None, :] < valid_2d[:, None, :, None]
    s = jnp.where(mask, s, -1e6)
    p = jax.nn.softmax(s, axis=-1)
    o = jnp.einsum("bhqk,bhkd->bhqd", p, vh).transpose(0, 2, 1, 3).reshape(B, Sq, D)
    return o @ wo


def _ref_addnorm(x, y, g, b):
    z = x + y
    mean = jnp.mean(z, axis=-1, keepdims=True)
    var = jnp.mean((z - mean) ** 2, axis=-1, keepdims=True)
    return (z - mean) / jnp.sqrt(var + 1e-5) * g[0] + b[0]


def _ref_forward(params, X, enc_outputs, enc_valid_lens):
    B, T, D = X.shape
    dec_valid = jnp.broadcast_to(jnp.arange(1, T + 1, dtype=jnp.int32), (B, T))
    X2 = _ref_mha(X, X, dec_valid, params["wq1"], params["wk1"], params["wv1"],
                  params["wo1"], params["num_heads"])
    Y = _ref_addnorm(X, X2, params["ln1_g"], params["ln1_b"])
    enc_valid_2d = jnp.broadcast_to(enc_valid_lens.astype(jnp.int32)[:, None], (B, T))
    Y2 = _ref_mha(Y, enc_outputs, enc_valid_2d, params["wq2"], params["wk2"],
                  params["wv2"], params["wo2"], params["num_heads"])
    Z = _ref_addnorm(Y, Y2, params["ln2_g"], params["ln2_b"])
    h = jnp.maximum(Z @ params["w_ffn1"] + params["b_ffn1"][0], 0.0)
    F = h @ params["w_ffn2"] + params["b_ffn2"][0]
    return _ref_addnorm(Z, F, params["ln3_g"], params["ln3_b"])


# ----------------------------------------------------------------------------
if __name__ == "__main__":
    B, T, D = 2, 8, 32        # batch, num_steps, num_hiddens
    H = 4                     # num_heads
    FFN_H = 64                # ffn_num_hiddens
    SE = 8                    # encoder sequence length

    key = jax.random.PRNGKey(0)
    ks = jax.random.split(key, 16)
    init = lambda k, shape: (0.05 * jax.random.normal(k, shape, dtype=jnp.float32))

    params = {
        "num_heads": H,
        # attention1 (masked self-attention), bias=False as in d2l.MultiHeadAttention
        "wq1": init(ks[0], (D, D)), "wk1": init(ks[1], (D, D)),
        "wv1": init(ks[2], (D, D)), "wo1": init(ks[3], (D, D)),
        # attention2 (enc-dec attention)
        "wq2": init(ks[4], (D, D)), "wk2": init(ks[5], (D, D)),
        "wv2": init(ks[6], (D, D)), "wo2": init(ks[7], (D, D)),
        # PositionWiseFFN (Linear has bias)
        "w_ffn1": init(ks[8], (D, FFN_H)), "b_ffn1": init(ks[9], (1, FFN_H)),
        "w_ffn2": init(ks[10], (FFN_H, D)), "b_ffn2": init(ks[11], (1, D)),
        # LayerNorm(norm_shape=(D,)) params
        "ln1_g": jnp.ones((1, D), jnp.float32), "ln1_b": jnp.zeros((1, D), jnp.float32),
        "ln2_g": jnp.ones((1, D), jnp.float32), "ln2_b": jnp.zeros((1, D), jnp.float32),
        "ln3_g": jnp.ones((1, D), jnp.float32), "ln3_b": jnp.zeros((1, D), jnp.float32),
    }

    X = jax.random.normal(ks[12], (B, T, D), dtype=jnp.float32)
    enc_outputs = jax.random.normal(ks[13], (B, SE, D), dtype=jnp.float32)
    enc_valid_lens = jnp.array([8, 5], dtype=jnp.int32)

    state = (enc_outputs, enc_valid_lens, [None])
    out, new_state = decoder_block_forward(params, X, state, block_idx=0, training=True)
    out = jax.block_until_ready(out)

    ref = _ref_forward(params, X, enc_outputs, enc_valid_lens)
    assert out.shape == (B, T, D)
    assert jnp.max(jnp.abs(out - ref)) < 1e-4, float(jnp.max(jnp.abs(out - ref)))
    assert new_state[2][0].shape == (B, T, D)

    # Also exercise the two-block (v7x megacore) path for correctness.
    out2, _ = decoder_block_forward(params, X, (enc_outputs, enc_valid_lens, [None]),
                                    block_idx=0, training=True, num_batch_blocks=2)
    out2 = jax.block_until_ready(out2)
    assert jnp.max(jnp.abs(out2 - ref)) < 1e-4, float(jnp.max(jnp.abs(out2 - ref)))

    print("KERNEL_OK")
</pallas_src>

<mosaic_0001>
module attributes {stable_mosaic.version = 11 : i64} {
  func.func @_decoder_block_kernel(%arg0: i32, %arg1: memref<2xi32, #tpu.memory_space<smem>>, %arg2: memref<16x32xf32, #tpu.memory_space<vmem>>, %arg3: memref<16x32xf32, #tpu.memory_space<vmem>>, %arg4: memref<16x32xf32, #tpu.memory_space<vmem>>, %arg5: memref<32x32xf32, #tpu.memory_space<vmem>>, %arg6: memref<32x64xf32, #tpu.memory_space<vmem>>, %arg7: memref<32x32xf32, #tpu.memory_space<vmem>>, %arg8: memref<32x32xf32, #tpu.memory_space<vmem>>, %arg9: memref<32x64xf32, #tpu.memory_space<vmem>>, %arg10: memref<32x32xf32, #tpu.memory_space<vmem>>, %arg11: memref<32x64xf32, #tpu.memory_space<vmem>>, %arg12: memref<1x64xf32, #tpu.memory_space<vmem>>, %arg13: memref<64x32xf32, #tpu.memory_space<vmem>>, %arg14: memref<1x32xf32, #tpu.memory_space<vmem>>, %arg15: memref<1x32xf32, #tpu.memory_space<vmem>>, %arg16: memref<1x32xf32, #tpu.memory_space<vmem>>, %arg17: memref<1x32xf32, #tpu.memory_space<vmem>>, %arg18: memref<1x32xf32, #tpu.memory_space<vmem>>, %arg19: memref<1x32xf32, #tpu.memory_space<vmem>>, %arg20: memref<1x32xf32, #tpu.memory_space<vmem>>, %arg21: memref<16x32xf32, #tpu.memory_space<vmem>>) attributes {dimension_semantics = [#tpu.dimension_semantics<parallel>], iteration_bounds = array<i64: 1>, scalar_prefetch = 1 : i64, scratch_operands = 0 : i64, tpu.core_type = #tpu.core_type<tc>, window_params = [{transform_indices = @transform_0, window_bounds = array<i64: 16, 32>}, {transform_indices = @transform_1, window_bounds = array<i64: 16, 32>}, {transform_indices = @transform_2, window_bounds = array<i64: 16, 32>}, {pipeline_mode = #tpu.pipeline_mode<synchronous>, transform_indices = @transform_3, window_bounds = array<i64: 32, 32>}, {pipeline_mode = #tpu.pipeline_mode<synchronous>, transform_indices = @transform_4, window_bounds = array<i64: 32, 64>}, {pipeline_mode = #tpu.pipeline_mode<synchronous>, transform_indices = @transform_5, window_bounds = array<i64: 32, 32>}, {pipeline_mode = #tpu.pipeline_mode<synchronous>, transform_indices = @transform_6, window_bounds = array<i64: 32, 32>}, {pipeline_mode = #tpu.pipeline_mode<synchronous>, transform_indices = @transform_7, window_bounds = array<i64: 32, 64>}, {pipeline_mode = #tpu.pipeline_mode<synchronous>, transform_indices = @transform_8, window_bounds = array<i64: 32, 32>}, {pipeline_mode = #tpu.pipeline_mode<synchronous>, transform_indices = @transform_9, window_bounds = array<i64: 32, 64>}, {pipeline_mode = #tpu.pipeline_mode<synchronous>, transform_indices = @transform_10, window_bounds = array<i64: 1, 64>}, {pipeline_mode = #tpu.pipeline_mode<synchronous>, transform_indices = @transform_11, window_bounds = array<i64: 64, 32>}, {pipeline_mode = #tpu.pipeline_mode<synchronous>, transform_indices = @transform_12, window_bounds = array<i64: 1, 32>}, {pipeline_mode = #tpu.pipeline_mode<synchronous>, transform_indices = @transform_13, window_bounds = array<i64: 1, 32>}, {pipeline_mode = #tpu.pipeline_mode<synchronous>, transform_indices = @transform_14, window_bounds = array<i64: 1, 32>}, {pipeline_mode = #tpu.pipeline_mode<synchronous>, transform_indices = @transform_15, window_bounds = array<i64: 1, 32>}, {pipeline_mode = #tpu.pipeline_mode<synchronous>, transform_indices = @transform_16, window_bounds = array<i64: 1, 32>}, {pipeline_mode = #tpu.pipeline_mode<synchronous>, transform_indices = @transform_17, window_bounds = array<i64: 1, 32>}, {pipeline_mode = #tpu.pipeline_mode<synchronous>, transform_indices = @transform_18, window_bounds = array<i64: 1, 32>}, {transform_indices = @transform_19, window_bounds = array<i64: 16, 32>}]} {
    %c0 = arith.constant 0 : index
    %c0_0 = arith.constant 0 : index
    %0 = vector.load %arg2[%c0, %c0_0] : memref<16x32xf32, #tpu.memory_space<vmem>>, vector<16x32xf32>
    %c0_1 = arith.constant 0 : index
    %c0_2 = arith.constant 0 : index
    %1 = vector.load %arg3[%c0_1, %c0_2] : memref<16x32xf32, #tpu.memory_space<vmem>>, vector<16x32xf32>
    %c0_3 = arith.constant 0 : index
    %c0_4 = arith.constant 0 : index
    %2 = vector.load %arg4[%c0_3, %c0_4] : memref<16x32xf32, #tpu.memory_space<vmem>>, vector<16x32xf32>
    %3 = tpu.iota {dimensions = array<i32: 0>} : vector<8x8xi32>
    %4 = tpu.iota {dimensions = array<i32: 1>} : vector<8x8xi32>
    %5 = arith.cmpi sle, %4, %3 : vector<8x8xi32>
    %6 = tpu.iota {dimensions = array<i32: 1>} : vector<8x8xi32>
    %c2_i32 = arith.constant 2 : i32
    %7 = arith.muli %arg0, %c2_i32 : i32
    %c0_i32 = arith.constant 0 : i32
    %8 = arith.addi %7, %c0_i32 : i32
    %9 = arith.index_cast %8 : i32 to index
    %10 = memref.load %arg1[%9] : memref<2xi32, #tpu.memory_space<smem>>
    %11 = vector.broadcast %10 : i32 to vector<8x8xi32>
    %12 = arith.cmpi slt, %6, %11 : vector<8x8xi32>
    %c1_i32 = arith.constant 1 : i32
    %13 = arith.addi %7, %c1_i32 : i32
    %14 = arith.index_cast %13 : i32 to index
    %15 = memref.load %arg1[%14] : memref<2xi32, #tpu.memory_space<smem>>
    %16 = vector.broadcast %15 : i32 to vector<8x8xi32>
    %17 = arith.cmpi slt, %6, %16 : vector<8x8xi32>
    %c0_5 = arith.constant 0 : index
    %c0_6 = arith.constant 0 : index
    %18 = vector.load %arg5[%c0_5, %c0_6] : memref<32x32xf32, #tpu.memory_space<vmem>>, vector<32x32xf32>
    %c0_7 = arith.constant 0 : index
    %c0_8 = arith.constant 0 : index
    %19 = vector.load %arg6[%c0_7, %c0_8] : memref<32x64xf32, #tpu.memory_space<vmem>>, vector<32x64xf32>
    %c0_9 = arith.constant 0 : index
    %c0_10 = arith.constant 0 : index
    %20 = vector.load %arg7[%c0_9, %c0_10] : memref<32x32xf32, #tpu.memory_space<vmem>>, vector<32x32xf32>
    %cst = arith.constant dense<0.000000e+00> : vector<16x32xf32>
    %21 = tpu.matmul %0, %18, %cst {dimension_numbers = #tpu.dot_dimension_numbers<[1], [0], [0], [1], [0, 0, 1, 1], [], []>} : vector<16x32xf32>, vector<32x32xf32>, vector<16x32xf32> -> vector<16x32xf32>
    %cst_11 = arith.constant dense<0.000000e+00> : vector<16x64xf32>
    %22 = tpu.matmul %1, %19, %cst_11 {dimension_numbers = #tpu.dot_dimension_numbers<[1], [0], [0], [1], [0, 0, 1, 1], [], []>} : vector<16x32xf32>, vector<32x64xf32>, vector<16x64xf32> -> vector<16x64xf32>
    %23 = vector.extract_strided_slice %21 {offsets = [0, 0], sizes = [8, 32], strides = [1, 1]} : vector<16x32xf32> to vector<8x32xf32>
    %24 = vector.extract_strided_slice %22 {offsets = [0, 0], sizes = [8, 32], strides = [1, 1]} : vector<16x64xf32> to vector<8x32xf32>
    %25 = vector.extract_strided_slice %22 {offsets = [0, 32], sizes = [8, 32], strides = [1, 1]} : vector<16x64xf32> to vector<8x32xf32>
    %26 = vector.extract_strided_slice %23 {offsets = [0, 0], sizes = [8, 8], strides = [1, 1]} : vector<8x32xf32> to vector<8x8xf32>
    %27 = vector.extract_strided_slice %24 {offsets = [0, 0], sizes = [8, 8], strides = [1, 1]} : vector<8x32xf32> to vector<8x8xf32>
    %cst_12 = arith.constant dense<0.000000e+00> : vector<8x8xf32>
    %28 = tpu.matmul %26, %27, %cst_12 {dimension_numbers = #tpu.dot_dimension_numbers<[1], [1], [0], [0], [0, 0, 1, 0], [], []>} : vector<8x8xf32>, vector<8x8xf32>, vector<8x8xf32> -> vector<8x8xf32>
    %cst_13 = arith.constant 0.353553385 : f32
    %29 = vector.broadcast %cst_13 : f32 to vector<8x8xf32>
    %30 = arith.mulf %28, %29 : vector<8x8xf32>
    %cst_14 = arith.constant -1.000000e+06 : f32
    %31 = vector.broadcast %cst_14 : f32 to vector<8x8xf32>
    %32 = arith.select %5, %30, %31 : vector<8x8xi1>, vector<8x8xf32>
    %cst_15 = arith.constant dense<0xFF800000> : vector<8xf32>
    %33 = vector.multi_reduction <maximumf>, %32, %cst_15 [1] : vector<8x8xf32> to vector<8xf32>
    %34 = vector.shape_cast %33 : vector<8xf32> to vector<8x1xf32>
    %35 = vector.broadcast %34 : vector<8x1xf32> to vector<8x8xf32>
    %36 = arith.subf %32, %35 : vector<8x8xf32>
    %37 = math.exp %36 : vector<8x8xf32>
    %cst_16 = arith.constant dense<0.000000e+00> : vector<8xf32>
    %38 = vector.multi_reduction <add>, %37, %cst_16 [1] : vector<8x8xf32> to vector<8xf32>
    %39 = vector.shape_cast %38 : vector<8xf32> to vector<8x1xf32>
    %40 = vector.broadcast %39 : vector<8x1xf32> to vector<8x8xf32>
    %41 = arith.divf %37, %40 : vector<8x8xf32>
    %42 = vector.extract_strided_slice %25 {offsets = [0, 0], sizes = [8, 8], strides = [1, 1]} : vector<8x32xf32> to vector<8x8xf32>
    %cst_17 = arith.constant dense<0.000000e+00> : vector<8x8xf32>
    %43 = tpu.matmul %41, %42, %cst_17 {dimension_numbers = #tpu.dot_dimension_numbers<[1], [0], [0], [1], [0, 0, 1, 1], [], []>} : vector<8x8xf32>, vector<8x8xf32>, vector<8x8xf32> -> vector<8x8xf32>
    %44 = vector.extract_strided_slice %23 {offsets = [0, 8], sizes = [8, 8], strides = [1, 1]} : vector<8x32xf32> to vector<8x8xf32>
    %45 = vector.extract_strided_slice %24 {offsets = [0, 8], sizes = [8, 8], strides = [1, 1]} : vector<8x32xf32> to vector<8x8xf32>
    %cst_18 = arith.constant dense<0.000000e+00> : vector<8x8xf32>
    %46 = tpu.matmul %44, %45, %cst_18 {dimension_numbers = #tpu.dot_dimension_numbers<[1], [1], [0], [0], [0, 0, 1, 0], [], []>} : vector<8x8xf32>, vector<8x8xf32>, vector<8x8xf32> -> vector<8x8xf32>
    %cst_19 = arith.constant 0.353553385 : f32
    %47 = vector.broadcast %cst_19 : f32 to vector<8x8xf32>
    %48 = arith.mulf %46, %47 : vector<8x8xf32>
    %cst_20 = arith.constant -1.000000e+06 : f32
    %49 = vector.broadcast %cst_20 : f32 to vector<8x8xf32>
    %50 = arith.select %5, %48, %49 : vector<8x8xi1>, vector<8x8xf32>
    %cst_21 = arith.constant dense<0xFF800000> : vector<8xf32>
    %51 = vector.multi_reduction <maximumf>, %50, %cst_21 [1] : vector<8x8xf32> to vector<8xf32>
    %52 = vector.shape_cast %51 : vector<8xf32> to vector<8x1xf32>
    %53 = vector.broadcast %52 : vector<8x1xf32> to vector<8x8xf32>
    %54 = arith.subf %50, %53 : vector<8x8xf32>
    %55 = math.exp %54 : vector<8x8xf32>
    %cst_22 = arith.constant dense<0.000000e+00> : vector<8xf32>
    %56 = vector.multi_reduction <add>, %55, %cst_22 [1] : vector<8x8xf32> to vector<8xf32>
    %57 = vector.shape_cast %56 : vector<8xf32> to vector<8x1xf32>
    %58 = vector.broadcast %57 : vector<8x1xf32> to vector<8x8xf32>
    %59 = arith.divf %55, %58 : vector<8x8xf32>
    %60 = vector.extract_strided_slice %25 {offsets = [0, 8], sizes = [8, 8], strides = [1, 1]} : vector<8x32xf32> to vector<8x8xf32>
    %cst_23 = arith.constant dense<0.000000e+00> : vector<8x8xf32>
    %61 = tpu.matmul %59, %60, %cst_23 {dimension_numbers = #tpu.dot_dimension_numbers<[1], [0], [0], [1], [0, 0, 1, 1], [], []>} : vector<8x8xf32>, vector<8x8xf32>, vector<8x8xf32> -> vector<8x8xf32>
    %62 = vector.extract_strided_slice %23 {offsets = [0, 16], sizes = [8, 8], strides = [1, 1]} : vector<8x32xf32> to vector<8x8xf32>
    %63 = vector.extract_strided_slice %24 {offsets = [0, 16], sizes = [8, 8], strides = [1, 1]} : vector<8x32xf32> to vector<8x8xf32>
    %cst_24 = arith.constant dense<0.000000e+00> : vector<8x8xf32>
    %64 = tpu.matmul %62, %63, %cst_24 {dimension_numbers = #tpu.dot_dimension_numbers<[1], [1], [0], [0], [0, 0, 1, 0], [], []>} : vector<8x8xf32>, vector<8x8xf32>, vector<8x8xf32> -> vector<8x8xf32>
    %cst_25 = arith.constant 0.353553385 : f32
    %65 = vector.broadcast %cst_25 : f32 to vector<8x8xf32>
    %66 = arith.mulf %64, %65 : vector<8x8xf32>
    %cst_26 = arith.constant -1.000000e+06 : f32
    %67 = vector.broadcast %cst_26 : f32 to vector<8x8xf32>
    %68 = arith.select %5, %66, %67 : vector<8x8xi1>, vector<8x8xf32>
    %cst_27 = arith.constant dense<0xFF800000> : vector<8xf32>
    %69 = vector.multi_reduction <maximumf>, %68, %cst_27 [1] : vector<8x8xf32> to vector<8xf32>
    %70 = vector.shape_cast %69 : vector<8xf32> to vector<8x1xf32>
    %71 = vector.broadcast %70 : vector<8x1xf32> to vector<8x8xf32>
    %72 = arith.subf %68, %71 : vector<8x8xf32>
    %73 = math.exp %72 : vector<8x8xf32>
    %cst_28 = arith.constant dense<0.000000e+00> : vector<8xf32>
    %74 = vector.multi_reduction <add>, %73, %cst_28 [1] : vector<8x8xf32> to vector<8xf32>
    %75 = vector.shape_cast %74 : vector<8xf32> to vector<8x1xf32>
    %76 = vector.broadcast %75 : vector<8x1xf32> to vector<8x8xf32>
    %77 = arith.divf %73, %76 : vector<8x8xf32>
    %78 = vector.extract_strided_slice %25 {offsets = [0, 16], sizes = [8, 8], strides = [1, 1]} : vector<8x32xf32> to vector<8x8xf32>
    %cst_29 = arith.constant dense<0.000000e+00> : vector<8x8xf32>
    %79 = tpu.matmul %77, %78, %cst_29 {dimension_numbers = #tpu.dot_dimension_numbers<[1], [0], [0], [1], [0, 0, 1, 1], [], []>} : vector<8x8xf32>, vector<8x8xf32>, vector<8x8xf32> -> vector<8x8xf32>
    %80 = vector.extract_strided_slice %23 {offsets = [0, 24], sizes = [8, 8], strides = [1, 1]} : vector<8x32xf32> to vector<8x8xf32>
    %81 = vector.extract_strided_slice %24 {offsets = [0, 24], sizes = [8, 8], strides = [1, 1]} : vector<8x32xf32> to vector<8x8xf32>
    %cst_30 = arith.constant dense<0.000000e+00> : vector<8x8xf32>
    %82 = tpu.matmul %80, %81, %cst_30 {dimension_numbers = #tpu.dot_dimension_numbers<[1], [1], [0], [0], [0, 0, 1, 0], [], []>} : vector<8x8xf32>, vector<8x8xf32>, vector<8x8xf32> -> vector<8x8xf32>
    %cst_31 = arith.constant 0.353553385 : f32
    %83 = vector.broadcast %cst_31 : f32 to vector<8x8xf32>
    %84 = arith.mulf %82, %83 : vector<8x8xf32>
    %cst_32 = arith.constant -1.000000e+06 : f32
    %85 = vector.broadcast %cst_32 : f32 to vector<8x8xf32>
    %86 = arith.select %5, %84, %85 : vector<8x8xi1>, vector<8x8xf32>
    %cst_33 = arith.constant dense<0xFF800000> : vector<8xf32>
    %87 = vector.multi_reduction <maximumf>, %86, %cst_33 [1] : vector<8x8xf32> to vector<8xf32>
    %88 = vector.shape_cast %87 : vector<8xf32> to vector<8x1xf32>
    %89 = vector.broadcast %88 : vector<8x1xf32> to vector<8x8xf32>
    %90 = arith.subf %86, %89 : vector<8x8xf32>
    %91 = math.exp %90 : vector<8x8xf32>
    %cst_34 = arith.constant dense<0.000000e+00> : vector<8xf32>
    %92 = vector.multi_reduction <add>, %91, %cst_34 [1] : vector<8x8xf32> to vector<8xf32>
    %93 = vector.shape_cast %92 : vector<8xf32> to vector<8x1xf32>
    %94 = vector.broadcast %93 : vector<8x1xf32> to vector<8x8xf32>
    %95 = arith.divf %91, %94 : vector<8x8xf32>
    %96 = vector.extract_strided_slice %25 {offsets = [0, 24], sizes = [8, 8], strides = [1, 1]} : vector<8x32xf32> to vector<8x8xf32>
    %cst_35 = arith.constant dense<0.000000e+00> : vector<8x8xf32>
    %97 = tpu.matmul %95, %96, %cst_35 {dimension_numbers = #tpu.dot_dimension_numbers<[1], [0], [0], [1], [0, 0, 1, 1], [], []>} : vector<8x8xf32>, vector<8x8xf32>, vector<8x8xf32> -> vector<8x8xf32>
    %98 = tpu.concatenate %43, %61, %79, %97 in 1 : vector<8x8xf32>, vector<8x8xf32>, vector<8x8xf32>, vector<8x8xf32> -> vector<8x32xf32>
    %99 = vector.extract_strided_slice %21 {offsets = [8, 0], sizes = [8, 32], strides = [1, 1]} : vector<16x32xf32> to vector<8x32xf32>
    %100 = vector.extract_strided_slice %22 {offsets = [8, 0], sizes = [8, 32], strides = [1, 1]} : vector<16x64xf32> to vector<8x32xf32>
    %101 = vector.extract_strided_slice %22 {offsets = [8, 32], sizes = [8, 32], strides = [1, 1]} : vector<16x64xf32> to vector<8x32xf32>
    %102 = vector.extract_strided_slice %99 {offsets = [0, 0], sizes = [8, 8], strides = [1, 1]} : vector<8x32xf32> to vector<8x8xf32>
    %103 = vector.extract_strided_slice %100 {offsets = [0, 0], sizes = [8, 8], strides = [1, 1]} : vector<8x32xf32> to vector<8x8xf32>
    %cst_36 = arith.constant dense<0.000000e+00> : vector<8x8xf32>
    %104 = tpu.matmul %102, %103, %cst_36 {dimension_numbers = #tpu.dot_dimension_numbers<[1], [1], [0], [0], [0, 0, 1, 0], [], []>} : vector<8x8xf32>, vector<8x8xf32>, vector<8x8xf32> -> vector<8x8xf32>
    %cst_37 = arith.constant 0.353553385 : f32
    %105 = vector.broadcast %cst_37 : f32 to vector<8x8xf32>
    %106 = arith.mulf %104, %105 : vector<8x8xf32>
    %cst_38 = arith.constant -1.000000e+06 : f32
    %107 = vector.broadcast %cst_38 : f32 to vector<8x8xf32>
    %108 = arith.select %5, %106, %107 : vector<8x8xi1>, vector<8x8xf32>
    %cst_39 = arith.constant dense<0xFF800000> : vector<8xf32>
    %109 = vector.multi_reduction <maximumf>, %108, %cst_39 [1] : vector<8x8xf32> to vector<8xf32>
    %110 = vector.shape_cast %109 : vector<8xf32> to vector<8x1xf32>
    %111 = vector.broadcast %110 : vector<8x1xf32> to vector<8x8xf32>
    %112 = arith.subf %108, %111 : vector<8x8xf32>
    %113 = math.exp %112 : vector<8x8xf32>
    %cst_40 = arith.constant dense<0.000000e+00> : vector<8xf32>
    %114 = vector.multi_reduction <add>, %113, %cst_40 [1] : vector<8x8xf32> to vector<8xf32>
    %115 = vector.shape_cast %114 : vector<8xf32> to vector<8x1xf32>
    %116 = vector.broadcast %115 : vector<8x1xf32> to vector<8x8xf32>
    %117 = arith.divf %113, %116 : vector<8x8xf32>
    %118 = vector.extract_strided_slice %101 {offsets = [0, 0], sizes = [8, 8], strides = [1, 1]} : vector<8x32xf32> to vector<8x8xf32>
    %cst_41 = arith.constant dense<0.000000e+00> : vector<8x8xf32>
    %119 = tpu.matmul %117, %118, %cst_41 {dimension_numbers = #tpu.dot_dimension_numbers<[1], [0], [0], [1], [0, 0, 1, 1], [], []>} : vector<8x8xf32>, vector<8x8xf32>, vector<8x8xf32> -> vector<8x8xf32>
    %120 = vector.extract_strided_slice %99 {offsets = [0, 8], sizes = [8, 8], strides = [1, 1]} : vector<8x32xf32> to vector<8x8xf32>
    %121 = vector.extract_strided_slice %100 {offsets = [0, 8], sizes = [8, 8], strides = [1, 1]} : vector<8x32xf32> to vector<8x8xf32>
    %cst_42 = arith.constant dense<0.000000e+00> : vector<8x8xf32>
    %122 = tpu.matmul %120, %121, %cst_42 {dimension_numbers = #tpu.dot_dimension_numbers<[1], [1], [0], [0], [0, 0, 1, 0], [], []>} : vector<8x8xf32>, vector<8x8xf32>, vector<8x8xf32> -> vector<8x8xf32>
    %cst_43 = arith.constant 0.353553385 : f32
    %123 = vector.broadcast %cst_43 : f32 to vector<8x8xf32>
    %124 = arith.mulf %122, %123 : vector<8x8xf32>
    %cst_44 = arith.constant -1.000000e+06 : f32
    %125 = vector.broadcast %cst_44 : f32 to vector<8x8xf32>
    %126 = arith.select %5, %124, %125 : vector<8x8xi1>, vector<8x8xf32>
    %cst_45 = arith.constant dense<0xFF800000> : vector<8xf32>
    %127 = vector.multi_reduction <maximumf>, %126, %cst_45 [1] : vector<8x8xf32> to vector<8xf32>
    %128 = vector.shape_cast %127 : vector<8xf32> to vector<8x1xf32>
    %129 = vector.broadcast %128 : vector<8x1xf32> to vector<8x8xf32>
    %130 = arith.subf %126, %129 : vector<8x8xf32>
    %131 = math.exp %130 : vector<8x8xf32>
    %cst_46 = arith.constant dense<0.000000e+00> : vector<8xf32>
    %132 = vector.multi_reduction <add>, %131, %cst_46 [1] : vector<8x8xf32> to vector<8xf32>
    %133 = vector.shape_cast %132 : vector<8xf32> to vector<8x1xf32>
    %134 = vector.broadcast %133 : vector<8x1xf32> to vector<8x8xf32>
    %135 = arith.divf %131, %134 : vector<8x8xf32>
    %136 = vector.extract_strided_slice %101 {offsets = [0, 8], sizes = [8, 8], strides = [1, 1]} : vector<8x32xf32> to vector<8x8xf32>
    %cst_47 = arith.constant dense<0.000000e+00> : vector<8x8xf32>
    %137 = tpu.matmul %135, %136, %cst_47 {dimension_numbers = #tpu.dot_dimension_numbers<[1], [0], [0], [1], [0, 0, 1, 1], [], []>} : vector<8x8xf32>, vector<8x8xf32>, vector<8x8xf32> -> vector<8x8xf32>
    %138 = vector.extract_strided_slice %99 {offsets = [0, 16], sizes = [8, 8], strides = [1, 1]} : vector<8x32xf32> to vector<8x8xf32>
    %139 = vector.extract_strided_slice %100 {offsets = [0, 16], sizes = [8, 8], strides = [1, 1]} : vector<8x32xf32> to vector<8x8xf32>
    %cst_48 = arith.constant dense<0.000000e+00> : vector<8x8xf32>
    %140 = tpu.matmul %138, %139, %cst_48 {dimension_numbers = #tpu.dot_dimension_numbers<[1], [1], [0], [0], [0, 0, 1, 0], [], []>} : vector<8x8xf32>, vector<8x8xf32>, vector<8x8xf32> -> vector<8x8xf32>
    %cst_49 = arith.constant 0.353553385 : f32
    %141 = vector.broadcast %cst_49 : f32 to vector<8x8xf32>
    %142 = arith.mulf %140, %141 : vector<8x8xf32>
    %cst_50 = arith.constant -1.000000e+06 : f32
    %143 = vector.broadcast %cst_50 : f32 to vector<8x8xf32>
    %144 = arith.select %5, %142, %143 : vector<8x8xi1>, vector<8x8xf32>
    %cst_51 = arith.constant dense<0xFF800000> : vector<8xf32>
    %145 = vector.multi_reduction <maximumf>, %144, %cst_51 [1] : vector<8x8xf32> to vector<8xf32>
    %146 = vector.shape_cast %145 : vector<8xf32> to vector<8x1xf32>
    %147 = vector.broadcast %146 : vector<8x1xf32> to vector<8x8xf32>
    %148 = arith.subf %144, %147 : vector<8x8xf32>
    %149 = math.exp %148 : vector<8x8xf32>
    %cst_52 = arith.constant dense<0.000000e+00> : vector<8xf32>
    %150 = vector.multi_reduction <add>, %149, %cst_52 [1] : vector<8x8xf32> to vector<8xf32>
    %151 = vector.shape_cast %150 : vector<8xf32> to vector<8x1xf32>
    %152 = vector.broadcast %151 : vector<8x1xf32> to vector<8x8xf32>
    %153 = arith.divf %149, %152 : vector<8x8xf32>
    %154 = vector.extract_strided_slice %101 {offsets = [0, 16], sizes = [8, 8], strides = [1, 1]} : vector<8x32xf32> to vector<8x8xf32>
    %cst_53 = arith.constant dense<0.000000e+00> : vector<8x8xf32>
    %155 = tpu.matmul %153, %154, %cst_53 {dimension_numbers = #tpu.dot_dimension_numbers<[1], [0], [0], [1], [0, 0, 1, 1], [], []>} : vector<8x8xf32>, vector<8x8xf32>, vector<8x8xf32> -> vector<8x8xf32>
    %156 = vector.extract_strided_slice %99 {offsets = [0, 24], sizes = [8, 8], strides = [1, 1]} : vector<8x32xf32> to vector<8x8xf32>
    %157 = vector.extract_strided_slice %100 {offsets = [0, 24], sizes = [8, 8], strides = [1, 1]} : vector<8x32xf32> to vector<8x8xf32>
    %cst_54 = arith.constant dense<0.000000e+00> : vector<8x8xf32>
    %158 = tpu.matmul %156, %157, %cst_54 {dimension_numbers = #tpu.dot_dimension_numbers<[1], [1], [0], [0], [0, 0, 1, 0], [], []>} : vector<8x8xf32>, vector<8x8xf32>, vector<8x8xf32> -> vector<8x8xf32>
    %cst_55 = arith.constant 0.353553385 : f32
    %159 = vector.broadcast %cst_55 : f32 to vector<8x8xf32>
    %160 = arith.mulf %158, %159 : vector<8x8xf32>
    %cst_56 = arith.constant -1.000000e+06 : f32
    %161 = vector.broadcast %cst_56 : f32 to vector<8x8xf32>
    %162 = arith.select %5, %160, %161 : vector<8x8xi1>, vector<8x8xf32>
    %cst_57 = arith.constant dense<0xFF800000> : vector<8xf32>
    %163 = vector.multi_reduction <maximumf>, %162, %cst_57 [1] : vector<8x8xf32> to vector<8xf32>
    %164 = vector.shape_cast %163 : vector<8xf32> to vector<8x1xf32>
    %165 = vector.broadcast %164 : vector<8x1xf32> to vector<8x8xf32>
    %166 = arith.subf %162, %165 : vector<8x8xf32>
    %167 = math.exp %166 : vector<8x8xf32>
    %cst_58 = arith.constant dense<0.000000e+00> : vector<8xf32>
    %168 = vector.multi_reduction <add>, %167, %cst_58 [1] : vector<8x8xf32> to vector<8xf32>
    %169 = vector.shape_cast %168 : vector<8xf32> to vector<8x1xf32>
    %170 = vector.broadcast %169 : vector<8x1xf32> to vector<8x8xf32>
    %171 = arith.divf %167, %170 : vector<8x8xf32>
    %172 = vector.extract_strided_slice %101 {offsets = [0, 24], sizes = [8, 8], strides = [1, 1]} : vector<8x32xf32> to vector<8x8xf32>
    %cst_59 = arith.constant dense<0.000000e+00> : vector<8x8xf32>
    %173 = tpu.matmul %171, %172, %cst_59 {dimension_numbers = #tpu.dot_dimension_numbers<[1], [0], [0], [1], [0, 0, 1, 1], [], []>} : vector<8x8xf32>, vector<8x8xf32>, vector<8x8xf32> -> vector<8x8xf32>
    %174 = tpu.concatenate %119, %137, %155, %173 in 1 : vector<8x8xf32>, vector<8x8xf32>, vector<8x8xf32>, vector<8x8xf32> -> vector<8x32xf32>
    %175 = tpu.concatenate %98, %174 in 0 : vector<8x32xf32>, vector<8x32xf32> -> vector<16x32xf32>
    %cst_60 = arith.constant dense<0.000000e+00> : vector<16x32xf32>
    %176 = tpu.matmul %175, %20, %cst_60 {dimension_numbers = #tpu.dot_dimension_numbers<[1], [0], [0], [1], [0, 0, 1, 1], [], []>} : vector<16x32xf32>, vector<32x32xf32>, vector<16x32xf32> -> vector<16x32xf32>
    %c0_61 = arith.constant 0 : index
    %c0_62 = arith.constant 0 : index
    %177 = vector.load %arg15[%c0_61, %c0_62] : memref<1x32xf32, #tpu.memory_space<vmem>>, vector<1x32xf32>
    %c0_63 = arith.constant 0 : index
    %c0_64 = arith.constant 0 : index
    %178 = vector.load %arg16[%c0_63, %c0_64] : memref<1x32xf32, #tpu.memory_space<vmem>>, vector<1x32xf32>
    %179 = arith.addf %0, %176 : vector<16x32xf32>
    %cst_65 = arith.constant dense<0.000000e+00> : vector<16xf32>
    %180 = vector.multi_reduction <add>, %179, %cst_65 [1] : vector<16x32xf32> to vector<16xf32>
    %181 = vector.shape_cast %180 : vector<16xf32> to vector<16x1xf32>
    %cst_66 = arith.constant 3.200000e+01 : f32
    %182 = vector.broadcast %cst_66 : f32 to vector<16x1xf32>
    %183 = arith.divf %181, %182 : vector<16x1xf32>
    %184 = vector.broadcast %183 : vector<16x1xf32> to vector<16x32xf32>
    %185 = arith.subf %179, %184 : vector<16x32xf32>
    %186 = arith.mulf %185, %185 : vector<16x32xf32>
    %cst_67 = arith.constant dense<0.000000e+00> : vector<16xf32>
    %187 = vector.multi_reduction <add>, %186, %cst_67 [1] : vector<16x32xf32> to vector<16xf32>
    %188 = vector.shape_cast %187 : vector<16xf32> to vector<16x1xf32>
    %cst_68 = arith.constant 3.200000e+01 : f32
    %189 = vector.broadcast %cst_68 : f32 to vector<16x1xf32>
    %190 = arith.divf %188, %189 : vector<16x1xf32>
    %cst_69 = arith.constant 9.99999974E-6 : f32
    %191 = vector.broadcast %cst_69 : f32 to vector<16x1xf32>
    %192 = arith.addf %190, %191 : vector<16x1xf32>
    %193 = math.rsqrt %192 : vector<16x1xf32>
    %194 = vector.broadcast %193 : vector<16x1xf32> to vector<16x32xf32>
    %195 = arith.mulf %185, %194 : vector<16x32xf32>
    %196 = vector.broadcast %177 : vector<1x32xf32> to vector<16x32xf32>
    %197 = arith.mulf %195, %196 : vector<16x32xf32>
    %198 = vector.broadcast %178 : vector<1x32xf32> to vector<16x32xf32>
    %199 = arith.addf %197, %198 : vector<16x32xf32>
    %c0_70 = arith.constant 0 : index
    %c0_71 = arith.constant 0 : index
    %200 = vector.load %arg8[%c0_70, %c0_71] : memref<32x32xf32, #tpu.memory_space<vmem>>, vector<32x32xf32>
    %c0_72 = arith.constant 0 : index
    %c0_73 = arith.constant 0 : index
    %201 = vector.load %arg9[%c0_72, %c0_73] : memref<32x64xf32, #tpu.memory_space<vmem>>, vector<32x64xf32>
    %c0_74 = arith.constant 0 : index
    %c0_75 = arith.constant 0 : index
    %202 = vector.load %arg10[%c0_74, %c0_75] : memref<32x32xf32, #tpu.memory_space<vmem>>, vector<32x32xf32>
    %cst_76 = arith.constant dense<0.000000e+00> : vector<16x32xf32>
    %203 = tpu.matmul %199, %200, %cst_76 {dimension_numbers = #tpu.dot_dimension_numbers<[1], [0], [0], [1], [0, 0, 1, 1], [], []>} : vector<16x32xf32>, vector<32x32xf32>, vector<16x32xf32> -> vector<16x32xf32>
    %cst_77 = arith.constant dense<0.000000e+00> : vector<16x64xf32>
    %204 = tpu.matmul %2, %201, %cst_77 {dimension_numbers = #tpu.dot_dimension_numbers<[1], [0], [0], [1], [0, 0, 1, 1], [], []>} : vector<16x32xf32>, vector<32x64xf32>, vector<16x64xf32> -> vector<16x64xf32>
    %205 = vector.extract_strided_slice %203 {offsets = [0, 0], sizes = [8, 32], strides = [1, 1]} : vector<16x32xf32> to vector<8x32xf32>
    %206 = vector.extract_strided_slice %204 {offsets = [0, 0], sizes = [8, 32], strides = [1, 1]} : vector<16x64xf32> to vector<8x32xf32>
    %207 = vector.extract_strided_slice %204 {offsets = [0, 32], sizes = [8, 32], strides = [1, 1]} : vector<16x64xf32> to vector<8x32xf32>
    %208 = vector.extract_strided_slice %205 {offsets = [0, 0], sizes = [8, 8], strides = [1, 1]} : vector<8x32xf32> to vector<8x8xf32>
    %209 = vector.extract_strided_slice %206 {offsets = [0, 0], sizes = [8, 8], strides = [1, 1]} : vector<8x32xf32> to vector<8x8xf32>
    %cst_78 = arith.constant dense<0.000000e+00> : vector<8x8xf32>
    %210 = tpu.matmul %208, %209, %cst_78 {dimension_numbers = #tpu.dot_dimension_numbers<[1], [1], [0], [0], [0, 0, 1, 0], [], []>} : vector<8x8xf32>, vector<8x8xf32>, vector<8x8xf32> -> vector<8x8xf32>
    %cst_79 = arith.constant 0.353553385 : f32
    %211 = vector.broadcast %cst_79 : f32 to vector<8x8xf32>
    %212 = arith.mulf %210, %211 : vector<8x8xf32>
    %cst_80 = arith.constant -1.000000e+06 : f32
    %213 = vector.broadcast %cst_80 : f32 to vector<8x8xf32>
    %214 = arith.select %12, %212, %213 : vector<8x8xi1>, vector<8x8xf32>
    %cst_81 = arith.constant dense<0xFF800000> : vector<8xf32>
    %215 = vector.multi_reduction <maximumf>, %214, %cst_81 [1] : vector<8x8xf32> to vector<8xf32>
    %216 = vector.shape_cast %215 : vector<8xf32> to vector<8x1xf32>
    %217 = vector.broadcast %216 : vector<8x1xf32> to vector<8x8xf32>
    %218 = arith.subf %214, %217 : vector<8x8xf32>
    %219 = math.exp %218 : vector<8x8xf32>
    %cst_82 = arith.constant dense<0.000000e+00> : vector<8xf32>
    %220 = vector.multi_reduction <add>, %219, %cst_82 [1] : vector<8x8xf32> to vector<8xf32>
    %221 = vector.shape_cast %220 : vector<8xf32> to vector<8x1xf32>
    %222 = vector.broadcast %221 : vector<8x1xf32> to vector<8x8xf32>
    %223 = arith.divf %219, %222 : vector<8x8xf32>
    %224 = vector.extract_strided_slice %207 {offsets = [0, 0], sizes = [8, 8], strides = [1, 1]} : vector<8x32xf32> to vector<8x8xf32>
    %cst_83 = arith.constant dense<0.000000e+00> : vector<8x8xf32>
    %225 = tpu.matmul %223, %224, %cst_83 {dimension_numbers = #tpu.dot_dimension_numbers<[1], [0], [0], [1], [0, 0, 1, 1], [], []>} : vector<8x8xf32>, vector<8x8xf32>, vector<8x8xf32> -> vector<8x8xf32>
    %226 = vector.extract_strided_slice %205 {offsets = [0, 8], sizes = [8, 8], strides = [1, 1]} : vector<8x32xf32> to vector<8x8xf32>
    %227 = vector.extract_strided_slice %206 {offsets = [0, 8], sizes = [8, 8], strides = [1, 1]} : vector<8x32xf32> to vector<8x8xf32>
    %cst_84 = arith.constant dense<0.000000e+00> : vector<8x8xf32>
    %228 = tpu.matmul %226, %227, %cst_84 {dimension_numbers = #tpu.dot_dimension_numbers<[1], [1], [0], [0], [0, 0, 1, 0], [], []>} : vector<8x8xf32>, vector<8x8xf32>, vector<8x8xf32> -> vector<8x8xf32>
    %cst_85 = arith.constant 0.353553385 : f32
    %229 = vector.broadcast %cst_85 : f32 to vector<8x8xf32>
    %230 = arith.mulf %228, %229 : vector<8x8xf32>
    %cst_86 = arith.constant -1.000000e+06 : f32
    %231 = vector.broadcast %cst_86 : f32 to vector<8x8xf32>
    %232 = arith.select %12, %230, %231 : vector<8x8xi1>, vector<8x8xf32>
    %cst_87 = arith.constant dense<0xFF800000> : vector<8xf32>
    %233 = vector.multi_reduction <maximumf>, %232, %cst_87 [1] : vector<8x8xf32> to vector<8xf32>
    %234 = vector.shape_cast %233 : vector<8xf32> to vector<8x1xf32>
    %235 = vector.broadcast %234 : vector<8x1xf32> to vector<8x8xf32>
    %236 = arith.subf %232, %235 : vector<8x8xf32>
    %237 = math.exp %236 : vector<8x8xf32>
    %cst_88 = arith.constant dense<0.000000e+00> : vector<8xf32>
    %238 = vector.multi_reduction <add>, %237, %cst_88 [1] : vector<8x8xf32> to vector<8xf32>
    %239 = vector.shape_cast %238 : vector<8xf32> to vector<8x1xf32>
    %240 = vector.broadcast %239 : vector<8x1xf32> to vector<8x8xf32>
    %241 = arith.divf %237, %240 : vector<8x8xf32>
    %242 = vector.extract_strided_slice %207 {offsets = [0, 8], sizes = [8, 8], strides = [1, 1]} : vector<8x32xf32> to vector<8x8xf32>
    %cst_89 = arith.constant dense<0.000000e+00> : vector<8x8xf32>
    %243 = tpu.matmul %241, %242, %cst_89 {dimension_numbers = #tpu.dot_dimension_numbers<[1], [0], [0], [1], [0, 0, 1, 1], [], []>} : vector<8x8xf32>, vector<8x8xf32>, vector<8x8xf32> -> vector<8x8xf32>
    %244 = vector.extract_strided_slice %205 {offsets = [0, 16], sizes = [8, 8], strides = [1, 1]} : vector<8x32xf32> to vector<8x8xf32>
    %245 = vector.extract_strided_slice %206 {offsets = [0, 16], sizes = [8, 8], strides = [1, 1]} : vector<8x32xf32> to vector<8x8xf32>
    %cst_90 = arith.constant dense<0.000000e+00> : vector<8x8xf32>
    %246 = tpu.matmul %244, %245, %cst_90 {dimension_numbers = #tpu.dot_dimension_numbers<[1], [1], [0], [0], [0, 0, 1, 0], [], []>} : vector<8x8xf32>, vector<8x8xf32>, vector<8x8xf32> -> vector<8x8xf32>
    %cst_91 = arith.constant 0.353553385 : f32
    %247 = vector.broadcast %cst_91 : f32 to vector<8x8xf32>
    %248 = arith.mulf %246, %247 : vector<8x8xf32>
    %cst_92 = arith.constant -1.000000e+06 : f32
    %249 = vector.broadcast %cst_92 : f32 to vector<8x8xf32>
    %250 = arith.select %12, %248, %249 : vector<8x8xi1>, vector<8x8xf32>
    %cst_93 = arith.constant dense<0xFF800000> : vector<8xf32>
    %251 = vector.multi_reduction <maximumf>, %250, %cst_93 [1] : vector<8x8xf32> to vector<8xf32>
    %252 = vector.shape_cast %251 : vector<8xf32> to vector<8x1xf32>
    %253 = vector.broadcast %252 : vector<8x1xf32> to vector<8x8xf32>
    %254 = arith.subf %250, %253 : vector<8x8xf32>
    %255 = math.exp %254 : vector<8x8xf32>
    %cst_94 = arith.constant dense<0.000000e+00> : vector<8xf32>
    %256 = vector.multi_reduction <add>, %255, %cst_94 [1] : vector<8x8xf32> to vector<8xf32>
    %257 = vector.shape_cast %256 : vector<8xf32> to vector<8x1xf32>
    %258 = vector.broadcast %257 : vector<8x1xf32> to vector<8x8xf32>
    %259 = arith.divf %255, %258 : vector<8x8xf32>
    %260 = vector.extract_strided_slice %207 {offsets = [0, 16], sizes = [8, 8], strides = [1, 1]} : vector<8x32xf32> to vector<8x8xf32>
    %cst_95 = arith.constant dense<0.000000e+00> : vector<8x8xf32>
    %261 = tpu.matmul %259, %260, %cst_95 {dimension_numbers = #tpu.dot_dimension_numbers<[1], [0], [0], [1], [0, 0, 1, 1], [], []>} : vector<8x8xf32>, vector<8x8xf32>, vector<8x8xf32> -> vector<8x8xf32>
    %262 = vector.extract_strided_slice %205 {offsets = [0, 24], sizes = [8, 8], strides = [1, 1]} : vector<8x32xf32> to vector<8x8xf32>
    %263 = vector.extract_strided_slice %206 {offsets = [0, 24], sizes = [8, 8], strides = [1, 1]} : vector<8x32xf32> to vector<8x8xf32>
    %cst_96 = arith.constant dense<0.000000e+00> : vector<8x8xf32>
    %264 = tpu.matmul %262, %263, %cst_96 {dimension_numbers = #tpu.dot_dimension_numbers<[1], [1], [0], [0], [0, 0, 1, 0], [], []>} : vector<8x8xf32>, vector<8x8xf32>, vector<8x8xf32> -> vector<8x8xf32>
    %cst_97 = arith.constant 0.353553385 : f32
    %265 = vector.broadcast %cst_97 : f32 to vector<8x8xf32>
    %266 = arith.mulf %264, %265 : vector<8x8xf32>
    %cst_98 = arith.constant -1.000000e+06 : f32
    %267 = vector.broadcast %cst_98 : f32 to vector<8x8xf32>
    %268 = arith.select %12, %266, %267 : vector<8x8xi1>, vector<8x8xf32>
    %cst_99 = arith.constant dense<0xFF800000> : vector<8xf32>
    %269 = vector.multi_reduction <maximumf>, %268, %cst_99 [1] : vector<8x8xf32> to vector<8xf32>
    %270 = vector.shape_cast %269 : vector<8xf32> to vector<8x1xf32>
    %271 = vector.broadcast %270 : vector<8x1xf32> to vector<8x8xf32>
    %272 = arith.subf %268, %271 : vector<8x8xf32>
    %273 = math.exp %272 : vector<8x8xf32>
    %cst_100 = arith.constant dense<0.000000e+00> : vector<8xf32>
    %274 = vector.multi_reduction <add>, %273, %cst_100 [1] : vector<8x8xf32> to vector<8xf32>
    %275 = vector.shape_cast %274 : vector<8xf32> to vector<8x1xf32>
    %276 = vector.broadcast %275 : vector<8x1xf32> to vector<8x8xf32>
    %277 = arith.divf %273, %276 : vector<8x8xf32>
    %278 = vector.extract_strided_slice %207 {offsets = [0, 24], sizes = [8, 8], strides = [1, 1]} : vector<8x32xf32> to vector<8x8xf32>
    %cst_101 = arith.constant dense<0.000000e+00> : vector<8x8xf32>
    %279 = tpu.matmul %277, %278, %cst_101 {dimension_numbers = #tpu.dot_dimension_numbers<[1], [0], [0], [1], [0, 0, 1, 1], [], []>} : vector<8x8xf32>, vector<8x8xf32>, vector<8x8xf32> -> vector<8x8xf32>
    %280 = tpu.concatenate %225, %243, %261, %279 in 1 : vector<8x8xf32>, vector<8x8xf32>, vector<8x8xf32>, vector<8x8xf32> -> vector<8x32xf32>
    %281 = vector.extract_strided_slice %203 {offsets = [8, 0], sizes = [8, 32], strides = [1, 1]} : vector<16x32xf32> to vector<8x32xf32>
    %282 = vector.extract_strided_slice %204 {offsets = [8, 0], sizes = [8, 32], strides = [1, 1]} : vector<16x64xf32> to vector<8x32xf32>
    %283 = vector.extract_strided_slice %204 {offsets = [8, 32], sizes = [8, 32], strides = [1, 1]} : vector<16x64xf32> to vector<8x32xf32>
    %284 = vector.extract_strided_slice %281 {offsets = [0, 0], sizes = [8, 8], strides = [1, 1]} : vector<8x32xf32> to vector<8x8xf32>
    %285 = vector.extract_strided_slice %282 {offsets = [0, 0], sizes = [8, 8], strides = [1, 1]} : vector<8x32xf32> to vector<8x8xf32>
    %cst_102 = arith.constant dense<0.000000e+00> : vector<8x8xf32>
    %286 = tpu.matmul %284, %285, %cst_102 {dimension_numbers = #tpu.dot_dimension_numbers<[1], [1], [0], [0], [0, 0, 1, 0], [], []>} : vector<8x8xf32>, vector<8x8xf32>, vector<8x8xf32> -> vector<8x8xf32>
    %cst_103 = arith.constant 0.353553385 : f32
    %287 = vector.broadcast %cst_103 : f32 to vector<8x8xf32>
    %288 = arith.mulf %286, %287 : vector<8x8xf32>
    %cst_104 = arith.constant -1.000000e+06 : f32
    %289 = vector.broadcast %cst_104 : f32 to vector<8x8xf32>
    %290 = arith.select %17, %288, %289 : vector<8x8xi1>, vector<8x8xf32>
    %cst_105 = arith.constant dense<0xFF800000> : vector<8xf32>
    %291 = vector.multi_reduction <maximumf>, %290, %cst_105 [1] : vector<8x8xf32> to vector<8xf32>
    %292 = vector.shape_cast %291 : vector<8xf32> to vector<8x1xf32>
    %293 = vector.broadcast %292 : vector<8x1xf32> to vector<8x8xf32>
    %294 = arith.subf %290, %293 : vector<8x8xf32>
    %295 = math.exp %294 : vector<8x8xf32>
    %cst_106 = arith.constant dense<0.000000e+00> : vector<8xf32>
    %296 = vector.multi_reduction <add>, %295, %cst_106 [1] : vector<8x8xf32> to vector<8xf32>
    %297 = vector.shape_cast %296 : vector<8xf32> to vector<8x1xf32>
    %298 = vector.broadcast %297 : vector<8x1xf32> to vector<8x8xf32>
    %299 = arith.divf %295, %298 : vector<8x8xf32>
    %300 = vector.extract_strided_slice %283 {offsets = [0, 0], sizes = [8, 8], strides = [1, 1]} : vector<8x32xf32> to vector<8x8xf32>
    %cst_107 = arith.constant dense<0.000000e+00> : vector<8x8xf32>
    %301 = tpu.matmul %299, %300, %cst_107 {dimension_numbers = #tpu.dot_dimension_numbers<[1], [0], [0], [1], [0, 0, 1, 1], [], []>} : vector<8x8xf32>, vector<8x8xf32>, vector<8x8xf32> -> vector<8x8xf32>
    %302 = vector.extract_strided_slice %281 {offsets = [0, 8], sizes = [8, 8], strides = [1, 1]} : vector<8x32xf32> to vector<8x8xf32>
    %303 = vector.extract_strided_slice %282 {offsets = [0, 8], sizes = [8, 8], strides = [1, 1]} : vector<8x32xf32> to vector<8x8xf32>
    %cst_108 = arith.constant dense<0.000000e+00> : vector<8x8xf32>
    %304 = tpu.matmul %302, %303, %cst_108 {dimension_numbers = #tpu.dot_dimension_numbers<[1], [1], [0], [0], [0, 0, 1, 0], [], []>} : vector<8x8xf32>, vector<8x8xf32>, vector<8x8xf32> -> vector<8x8xf32>
    %cst_109 = arith.constant 0.353553385 : f32
    %305 = vector.broadcast %cst_109 : f32 to vector<8x8xf32>
    %306 = arith.mulf %304, %305 : vector<8x8xf32>
    %cst_110 = arith.constant -1.000000e+06 : f32
    %307 = vector.broadcast %cst_110 : f32 to vector<8x8xf32>
    %308 = arith.select %17, %306, %307 : vector<8x8xi1>, vector<8x8xf32>
    %cst_111 = arith.constant dense<0xFF800000> : vector<8xf32>
    %309 = vector.multi_reduction <maximumf>, %308, %cst_111 [1] : vector<8x8xf32> to vector<8xf32>
    %310 = vector.shape_cast %309 : vector<8xf32> to vector<8x1xf32>
    %311 = vector.broadcast %310 : vector<8x1xf32> to vector<8x8xf32>
    %312 = arith.subf %308, %311 : vector<8x8xf32>
    %313 = math.exp %312 : vector<8x8xf32>
    %cst_112 = arith.constant dense<0.000000e+00> : vector<8xf32>
    %314 = vector.multi_reduction <add>, %313, %cst_112 [1] : vector<8x8xf32> to vector<8xf32>
    %315 = vector.shape_cast %314 : vector<8xf32> to vector<8x1xf32>
    %316 = vector.broadcast %315 : vector<8x1xf32> to vector<8x8xf32>
    %317 = arith.divf %313, %316 : vector<8x8xf32>
    %318 = vector.extract_strided_slice %283 {offsets = [0, 8], sizes = [8, 8], strides = [1, 1]} : vector<8x32xf32> to vector<8x8xf32>
    %cst_113 = arith.constant dense<0.000000e+00> : vector<8x8xf32>
    %319 = tpu.matmul %317, %318, %cst_113 {dimension_numbers = #tpu.dot_dimension_numbers<[1], [0], [0], [1], [0, 0, 1, 1], [], []>} : vector<8x8xf32>, vector<8x8xf32>, vector<8x8xf32> -> vector<8x8xf32>
    %320 = vector.extract_strided_slice %281 {offsets = [0, 16], sizes = [8, 8], strides = [1, 1]} : vector<8x32xf32> to vector<8x8xf32>
    %321 = vector.extract_strided_slice %282 {offsets = [0, 16], sizes = [8, 8], strides = [1, 1]} : vector<8x32xf32> to vector<8x8xf32>
    %cst_114 = arith.constant dense<0.000000e+00> : vector<8x8xf32>
    %322 = tpu.matmul %320, %321, %cst_114 {dimension_numbers = #tpu.dot_dimension_numbers<[1], [1], [0], [0], [0, 0, 1, 0], [], []>} : vector<8x8xf32>, vector<8x8xf32>, vector<8x8xf32> -> vector<8x8xf32>
    %cst_115 = arith.constant 0.353553385 : f32
    %323 = vector.broadcast %cst_115 : f32 to vector<8x8xf32>
    %324 = arith.mulf %322, %323 : vector<8x8xf32>
    %cst_116 = arith.constant -1.000000e+06 : f32
    %325 = vector.broadcast %cst_116 : f32 to vector<8x8xf32>
    %326 = arith.select %17, %324, %325 : vector<8x8xi1>, vector<8x8xf32>
    %cst_117 = arith.constant dense<0xFF800000> : vector<8xf32>
    %327 = vector.multi_reduction <maximumf>, %326, %cst_117 [1] : vector<8x8xf32> to vector<8xf32>
    %328 = vector.shape_cast %327 : vector<8xf32> to vector<8x1xf32>
    %329 = vector.broadcast %328 : vector<8x1xf32> to vector<8x8xf32>
    %330 = arith.subf %326, %329 : vector<8x8xf32>
    %331 = math.exp %330 : vector<8x8xf32>
    %cst_118 = arith.constant dense<0.000000e+00> : vector<8xf32>
    %332 = vector.multi_reduction <add>, %331, %cst_118 [1] : vector<8x8xf32> to vector<8xf32>
    %333 = vector.shape_cast %332 : vector<8xf32> to vector<8x1xf32>
    %334 = vector.broadcast %333 : vector<8x1xf32> to vector<8x8xf32>
    %335 = arith.divf %331, %334 : vector<8x8xf32>
    %336 = vector.extract_strided_slice %283 {offsets = [0, 16], sizes = [8, 8], strides = [1, 1]} : vector<8x32xf32> to vector<8x8xf32>
    %cst_119 = arith.constant dense<0.000000e+00> : vector<8x8xf32>
    %337 = tpu.matmul %335, %336, %cst_119 {dimension_numbers = #tpu.dot_dimension_numbers<[1], [0], [0], [1], [0, 0, 1, 1], [], []>} : vector<8x8xf32>, vector<8x8xf32>, vector<8x8xf32> -> vector<8x8xf32>
    %338 = vector.extract_strided_slice %281 {offsets = [0, 24], sizes = [8, 8], strides = [1, 1]} : vector<8x32xf32> to vector<8x8xf32>
    %339 = vector.extract_strided_slice %282 {offsets = [0, 24], sizes = [8, 8], strides = [1, 1]} : vector<8x32xf32> to vector<8x8xf32>
    %cst_120 = arith.constant dense<0.000000e+00> : vector<8x8xf32>
    %340 = tpu.matmul %338, %339, %cst_120 {dimension_numbers = #tpu.dot_dimension_numbers<[1], [1], [0], [0], [0, 0, 1, 0], [], []>} : vector<8x8xf32>, vector<8x8xf32>, vector<8x8xf32> -> vector<8x8xf32>
    %cst_121 = arith.constant 0.353553385 : f32
    %341 = vector.broadcast %cst_121 : f32 to vector<8x8xf32>
    %342 = arith.mulf %340, %341 : vector<8x8xf32>
    %cst_122 = arith.constant -1.000000e+06 : f32
    %343 = vector.broadcast %cst_122 : f32 to vector<8x8xf32>
    %344 = arith.select %17, %342, %343 : vector<8x8xi1>, vector<8x8xf32>
    %cst_123 = arith.constant dense<0xFF800000> : vector<8xf32>
    %345 = vector.multi_reduction <maximumf>, %344, %cst_123 [1] : vector<8x8xf32> to vector<8xf32>
    %346 = vector.shape_cast %345 : vector<8xf32> to vector<8x1xf32>
    %347 = vector.broadcast %346 : vector<8x1xf32> to vector<8x8xf32>
    %348 = arith.subf %344, %347 : vector<8x8xf32>
    %349 = math.exp %348 : vector<8x8xf32>
    %cst_124 = arith.constant dense<0.000000e+00> : vector<8xf32>
    %350 = vector.multi_reduction <add>, %349, %cst_124 [1] : vector<8x8xf32> to vector<8xf32>
    %351 = vector.shape_cast %350 : vector<8xf32> to vector<8x1xf32>
    %352 = vector.broadcast %351 : vector<8x1xf32> to vector<8x8xf32>
    %353 = arith.divf %349, %352 : vector<8x8xf32>
    %354 = vector.extract_strided_slice %283 {offsets = [0, 24], sizes = [8, 8], strides = [1, 1]} : vector<8x32xf32> to vector<8x8xf32>
    %cst_125 = arith.constant dense<0.000000e+00> : vector<8x8xf32>
    %355 = tpu.matmul %353, %354, %cst_125 {dimension_numbers = #tpu.dot_dimension_numbers<[1], [0], [0], [1], [0, 0, 1, 1], [], []>} : vector<8x8xf32>, vector<8x8xf32>, vector<8x8xf32> -> vector<8x8xf32>
    %356 = tpu.concatenate %301, %319, %337, %355 in 1 : vector<8x8xf32>, vector<8x8xf32>, vector<8x8xf32>, vector<8x8xf32> -> vector<8x32xf32>
    %357 = tpu.concatenate %280, %356 in 0 : vector<8x32xf32>, vector<8x32xf32> -> vector<16x32xf32>
    %cst_126 = arith.constant dense<0.000000e+00> : vector<16x32xf32>
    %358 = tpu.matmul %357, %202, %cst_126 {dimension_numbers = #tpu.dot_dimension_numbers<[1], [0], [0], [1], [0, 0, 1, 1], [], []>} : vector<16x32xf32>, vector<32x32xf32>, vector<16x32xf32> -> vector<16x32xf32>
    %c0_127 = arith.constant 0 : index
    %c0_128 = arith.constant 0 : index
    %359 = vector.load %arg17[%c0_127, %c0_128] : memref<1x32xf32, #tpu.memory_space<vmem>>, vector<1x32xf32>
    %c0_129 = arith.constant 0 : index
    %c0_130 = arith.constant 0 : index
    %360 = vector.load %arg18[%c0_129, %c0_130] : memref<1x32xf32, #tpu.memory_space<vmem>>, vector<1x32xf32>
    %361 = arith.addf %199, %358 : vector<16x32xf32>
    %cst_131 = arith.constant dense<0.000000e+00> : vector<16xf32>
    %362 = vector.multi_reduction <add>, %361, %cst_131 [1] : vector<16x32xf32> to vector<16xf32>
    %363 = vector.shape_cast %362 : vector<16xf32> to vector<16x1xf32>
    %cst_132 = arith.constant 3.200000e+01 : f32
    %364 = vector.broadcast %cst_132 : f32 to vector<16x1xf32>
    %365 = arith.divf %363, %364 : vector<16x1xf32>
    %366 = vector.broadcast %365 : vector<16x1xf32> to vector<16x32xf32>
    %367 = arith.subf %361, %366 : vector<16x32xf32>
    %368 = arith.mulf %367, %367 : vector<16x32xf32>
    %cst_133 = arith.constant dense<0.000000e+00> : vector<16xf32>
    %369 = vector.multi_reduction <add>, %368, %cst_133 [1] : vector<16x32xf32> to vector<16xf32>
    %370 = vector.shape_cast %369 : vector<16xf32> to vector<16x1xf32>
    %cst_134 = arith.constant 3.200000e+01 : f32
    %371 = vector.broadcast %cst_134 : f32 to vector<16x1xf32>
    %372 = arith.divf %370, %371 : vector<16x1xf32>
    %cst_135 = arith.constant 9.99999974E-6 : f32
    %373 = vector.broadcast %cst_135 : f32 to vector<16x1xf32>
    %374 = arith.addf %372, %373 : vector<16x1xf32>
    %375 = math.rsqrt %374 : vector<16x1xf32>
    %376 = vector.broadcast %375 : vector<16x1xf32> to vector<16x32xf32>
    %377 = arith.mulf %367, %376 : vector<16x32xf32>
    %378 = vector.broadcast %359 : vector<1x32xf32> to vector<16x32xf32>
    %379 = arith.mulf %377, %378 : vector<16x32xf32>
    %380 = vector.broadcast %360 : vector<1x32xf32> to vector<16x32xf32>
    %381 = arith.addf %379, %380 : vector<16x32xf32>
    %c0_136 = arith.constant 0 : index
    %c0_137 = arith.constant 0 : index
    %382 = vector.load %arg11[%c0_136, %c0_137] : memref<32x64xf32, #tpu.memory_space<vmem>>, vector<32x64xf32>
    %cst_138 = arith.constant dense<0.000000e+00> : vector<16x64xf32>
    %383 = tpu.matmul %381, %382, %cst_138 {dimension_numbers = #tpu.dot_dimension_numbers<[1], [0], [0], [1], [0, 0, 1, 1], [], []>} : vector<16x32xf32>, vector<32x64xf32>, vector<16x64xf32> -> vector<16x64xf32>
    %c0_139 = arith.constant 0 : index
    %c0_140 = arith.constant 0 : index
    %384 = vector.load %arg12[%c0_139, %c0_140] : memref<1x64xf32, #tpu.memory_space<vmem>>, vector<1x64xf32>
    %385 = vector.broadcast %384 : vector<1x64xf32> to vector<16x64xf32>
    %386 = arith.addf %383, %385 : vector<16x64xf32>
    %cst_141 = arith.constant 0.000000e+00 : f32
    %387 = vector.broadcast %cst_141 : f32 to vector<16x64xf32>
    %388 = arith.maximumf %386, %387 : vector<16x64xf32>
    %c0_142 = arith.constant 0 : index
    %c0_143 = arith.constant 0 : index
    %389 = vector.load %arg13[%c0_142, %c0_143] : memref<64x32xf32, #tpu.memory_space<vmem>>, vector<64x32xf32>
    %cst_144 = arith.constant dense<0.000000e+00> : vector<16x32xf32>
    %390 = tpu.matmul %388, %389, %cst_144 {dimension_numbers = #tpu.dot_dimension_numbers<[1], [0], [0], [1], [0, 0, 1, 1], [], []>} : vector<16x64xf32>, vector<64x32xf32>, vector<16x32xf32> -> vector<16x32xf32>
    %c0_145 = arith.constant 0 : index
    %c0_146 = arith.constant 0 : index
    %391 = vector.load %arg14[%c0_145, %c0_146] : memref<1x32xf32, #tpu.memory_space<vmem>>, vector<1x32xf32>
    %392 = vector.broadcast %391 : vector<1x32xf32> to vector<16x32xf32>
    %393 = arith.addf %390, %392 : vector<16x32xf32>
    %c0_147 = arith.constant 0 : index
    %c0_148 = arith.constant 0 : index
    %394 = vector.load %arg19[%c0_147, %c0_148] : memref<1x32xf32, #tpu.memory_space<vmem>>, vector<1x32xf32>
    %c0_149 = arith.constant 0 : index
    %c0_150 = arith.constant 0 : index
    %395 = vector.load %arg20[%c0_149, %c0_150] : memref<1x32xf32, #tpu.memory_space<vmem>>, vector<1x32xf32>
    %396 = arith.addf %381, %393 : vector<16x32xf32>
    %cst_151 = arith.constant dense<0.000000e+00> : vector<16xf32>
    %397 = vector.multi_reduction <add>, %396, %cst_151 [1] : vector<16x32xf32> to vector<16xf32>
    %398 = vector.shape_cast %397 : vector<16xf32> to vector<16x1xf32>
    %cst_152 = arith.constant 3.200000e+01 : f32
    %399 = vector.broadcast %cst_152 : f32 to vector<16x1xf32>
    %400 = arith.divf %398, %399 : vector<16x1xf32>
    %401 = vector.broadcast %400 : vector<16x1xf32> to vector<16x32xf32>
    %402 = arith.subf %396, %401 : vector<16x32xf32>
    %403 = arith.mulf %402, %402 : vector<16x32xf32>
    %cst_153 = arith.constant dense<0.000000e+00> : vector<16xf32>
    %404 = vector.multi_reduction <add>, %403, %cst_153 [1] : vector<16x32xf32> to vector<16xf32>
    %405 = vector.shape_cast %404 : vector<16xf32> to vector<16x1xf32>
    %cst_154 = arith.constant 3.200000e+01 : f32
    %406 = vector.broadcast %cst_154 : f32 to vector<16x1xf32>
    %407 = arith.divf %405, %406 : vector<16x1xf32>
    %cst_155 = arith.constant 9.99999974E-6 : f32
    %408 = vector.broadcast %cst_155 : f32 to vector<16x1xf32>
    %409 = arith.addf %407, %408 : vector<16x1xf32>
    %410 = math.rsqrt %409 : vector<16x1xf32>
    %411 = vector.broadcast %410 : vector<16x1xf32> to vector<16x32xf32>
    %412 = arith.mulf %402, %411 : vector<16x32xf32>
    %413 = vector.broadcast %394 : vector<1x32xf32> to vector<16x32xf32>
    %414 = arith.mulf %412, %413 : vector<16x32xf32>
    %415 = vector.broadcast %395 : vector<1x32xf32> to vector<16x32xf32>
    %416 = arith.addf %414, %415 : vector<16x32xf32>
    %c0_156 = arith.constant 0 : index
    %c0_157 = arith.constant 0 : index
    %417 = vector.load %arg21[%c0_156, %c0_157] : memref<16x32xf32, #tpu.memory_space<vmem>>, vector<16x32xf32>
    tpu.vector_store %arg21[%c0_156, %c0_157], %416 {strides = array<i32>} : memref<16x32xf32, #tpu.memory_space<vmem>>, vector<16x32xf32>,
    return
  }
  func.func @transform_0(%arg0: i32, %arg1: memref<2xi32, #tpu.memory_space<smem>>) -> (i32, i32) {
    %c0_i32 = arith.constant 0 : i32
    %c0_i32_0 = arith.constant 0 : i32
    return %arg0, %c0_i32 : i32, i32
  }
  func.func @transform_1(%arg0: i32, %arg1: memref<2xi32, #tpu.memory_space<smem>>) -> (i32, i32) {
    %c0_i32 = arith.constant 0 : i32
    %c0_i32_0 = arith.constant 0 : i32
    return %arg0, %c0_i32 : i32, i32
  }
  func.func @transform_2(%arg0: i32, %arg1: memref<2xi32, #tpu.memory_space<smem>>) -> (i32, i32) {
    %c0_i32 = arith.constant 0 : i32
    %c0_i32_0 = arith.constant 0 : i32
    return %arg0, %c0_i32 : i32, i32
  }
  func.func @transform_3(%arg0: i32, %arg1: memref<2xi32, #tpu.memory_space<smem>>) -> (i32, i32) {
    %c0_i32 = arith.constant 0 : i32
    %c0_i32_0 = arith.constant 0 : i32
    %c0_i32_1 = arith.constant 0 : i32
    return %c0_i32, %c0_i32_0 : i32, i32
  }
  func.func @transform_4(%arg0: i32, %arg1: memref<2xi32, #tpu.memory_space<smem>>) -> (i32, i32) {
    %c0_i32 = arith.constant 0 : i32
    %c0_i32_0 = arith.constant 0 : i32
    %c0_i32_1 = arith.constant 0 : i32
    return %c0_i32, %c0_i32_0 : i32, i32
  }
  func.func @transform_5(%arg0: i32, %arg1: memref<2xi32, #tpu.memory_space<smem>>) -> (i32, i32) {
    %c0_i32 = arith.constant 0 : i32
    %c0_i32_0 = arith.constant 0 : i32
    %c0_i32_1 = arith.constant 0 : i32
    return %c0_i32, %c0_i32_0 : i32, i32
  }
  func.func @transform_6(%arg0: i32, %arg1: memref<2xi32, #tpu.memory_space<smem>>) -> (i32, i32) {
    %c0_i32 = arith.constant 0 : i32
    %c0_i32_0 = arith.constant 0 : i32
    %c0_i32_1 = arith.constant 0 : i32
    return %c0_i32, %c0_i32_0 : i32, i32
  }
  func.func @transform_7(%arg0: i32, %arg1: memref<2xi32, #tpu.memory_space<smem>>) -> (i32, i32) {
    %c0_i32 = arith.constant 0 : i32
    %c0_i32_0 = arith.constant 0 : i32
    %c0_i32_1 = arith.constant 0 : i32
    return %c0_i32, %c0_i32_0 : i32, i32
  }
  func.func @transform_8(%arg0: i32, %arg1: memref<2xi32, #tpu.memory_space<smem>>) -> (i32, i32) {
    %c0_i32 = arith.constant 0 : i32
    %c0_i32_0 = arith.constant 0 : i32
    %c0_i32_1 = arith.constant 0 : i32
    return %c0_i32, %c0_i32_0 : i32, i32
  }
  func.func @transform_9(%arg0: i32, %arg1: memref<2xi32, #tpu.memory_space<smem>>) -> (i32, i32) {
    %c0_i32 = arith.constant 0 : i32
    %c0_i32_0 = arith.constant 0 : i32
    %c0_i32_1 = arith.constant 0 : i32
    return %c0_i32, %c0_i32_0 : i32, i32
  }
  func.func @transform_10(%arg0: i32, %arg1: memref<2xi32, #tpu.memory_space<smem>>) -> (i32, i32) {
    %c0_i32 = arith.constant 0 : i32
    %c0_i32_0 = arith.constant 0 : i32
    %c0_i32_1 = arith.constant 0 : i32
    return %c0_i32, %c0_i32_0 : i32, i32
  }
  func.func @transform_11(%arg0: i32, %arg1: memref<2xi32, #tpu.memory_space<smem>>) -> (i32, i32) {
    %c0_i32 = arith.constant 0 : i32
    %c0_i32_0 = arith.constant 0 : i32
    %c0_i32_1 = arith.constant 0 : i32
    return %c0_i32, %c0_i32_0 : i32, i32
  }
  func.func @transform_12(%arg0: i32, %arg1: memref<2xi32, #tpu.memory_space<smem>>) -> (i32, i32) {
    %c0_i32 = arith.constant 0 : i32
    %c0_i32_0 = arith.constant 0 : i32
    %c0_i32_1 = arith.constant 0 : i32
    return %c0_i32, %c0_i32_0 : i32, i32
  }
  func.func @transform_13(%arg0: i32, %arg1: memref<2xi32, #tpu.memory_space<smem>>) -> (i32, i32) {
    %c0_i32 = arith.constant 0 : i32
    %c0_i32_0 = arith.constant 0 : i32
    %c0_i32_1 = arith.constant 0 : i32
    return %c0_i32, %c0_i32_0 : i32, i32
  }
  func.func @transform_14(%arg0: i32, %arg1: memref<2xi32, #tpu.memory_space<smem>>) -> (i32, i32) {
    %c0_i32 = arith.constant 0 : i32
    %c0_i32_0 = arith.constant 0 : i32
    %c0_i32_1 = arith.constant 0 : i32
    return %c0_i32, %c0_i32_0 : i32, i32
  }
  func.func @transform_15(%arg0: i32, %arg1: memref<2xi32, #tpu.memory_space<smem>>) -> (i32, i32) {
    %c0_i32 = arith.constant 0 : i32
    %c0_i32_0 = arith.constant 0 : i32
    %c0_i32_1 = arith.constant 0 : i32
    return %c0_i32, %c0_i32_0 : i32, i32
  }
  func.func @transform_16(%arg0: i32, %arg1: memref<2xi32, #tpu.memory_space<smem>>) -> (i32, i32) {
    %c0_i32 = arith.constant 0 : i32
    %c0_i32_0 = arith.constant 0 : i32
    %c0_i32_1 = arith.constant 0 : i32
    return %c0_i32, %c0_i32_0 : i32, i32
  }
  func.func @transform_17(%arg0: i32, %arg1: memref<2xi32, #tpu.memory_space<smem>>) -> (i32, i32) {
    %c0_i32 = arith.constant 0 : i32
    %c0_i32_0 = arith.constant 0 : i32
    %c0_i32_1 = arith.constant 0 : i32
    return %c0_i32, %c0_i32_0 : i32, i32
  }
  func.func @transform_18(%arg0: i32, %arg1: memref<2xi32, #tpu.memory_space<smem>>) -> (i32, i32) {
    %c0_i32 = arith.constant 0 : i32
    %c0_i32_0 = arith.constant 0 : i32
    %c0_i32_1 = arith.constant 0 : i32
    return %c0_i32, %c0_i32_0 : i32, i32
  }
  func.func @transform_19(%arg0: i32, %arg1: memref<2xi32, #tpu.memory_space<smem>>) -> (i32, i32) {
    %c0_i32 = arith.constant 0 : i32
    %c0_i32_0 = arith.constant 0 : i32
    return %arg0, %c0_i32 : i32, i32
  }
}

</mosaic_0001>

<bundles_post_ra>
// kernel: tpu_custom_call.1
= control target key start
LH: loop header
LB: loop body
LE: loop exit
PB: predicated region body
PF: predicated region fallthrough
CT: control target
= control target key end

     0   :  { %s5354_s0 = inlined_call_operand.hbm [shape: s32[2], index: 0, kind: input, shape index: {}]   ;;  %s5355_s1 = inlined_call_operand.hbm [shape: f32[16,32], index: 1, kind: input, shape index: {}]   ;;  %s5356_s2 = inlined_call_operand.hbm [shape: f32[16,32], index: 2, kind: input, shape index: {}]   ;;  %s5357_s3 = inlined_call_operand.hbm [shape: f32[16,32], index: 3, kind: input, shape index: {}]   ;;  %s5358_s4 = inlined_call_operand.vmem [shape: f32[32,32], index: 4, kind: input, shape index: {}]   ;;  %s5359_s5 = inlined_call_operand.vmem [shape: f32[32,64], index: 5, kind: input, shape index: {}]   ;;  %s5360_s6 = inlined_call_operand.vmem [shape: f32[32,32], index: 6, kind: input, shape index: {}]   ;;  %s5361_s7 = inlined_call_operand.hbm [shape: f32[32,32], index: 7, kind: input, shape index: {}]   ;;  %s5362_s8 = inlined_call_operand.hbm [shape: f32[32,64], index: 8, kind: input, shape index: {}]   ;;  %s5363_s9 = inlined_call_operand.hbm [shape: f32[32,32], index: 9, kind: input, shape index: {}]   ;;  %s5364_s10 = inlined_call_operand.hbm [shape: f32[32,64], index: 10, kind: input, shape index: {}]   ;;  %s5365_s11 = inlined_call_operand.vmem [shape: f32[1,64], index: 11, kind: input, shape index: {}]   ;;  %s5366_s12 = inlined_call_operand.vmem [shape: f32[64,32], index: 12, kind: input, shape index: {}]   ;;  %s5367_s13 = inlined_call_operand.vmem [shape: f32[1,32], index: 13, kind: input, shape index: {}]   ;;  %s5368_s14 = inlined_call_operand.vmem [shape: f32[1,32], index: 14, kind: input, shape index: {}]   ;;  %s5369_s15 = inlined_call_operand.vmem [shape: f32[1,32], index: 15, kind: input, shape index: {}]   ;;  %s5370_s16 = inlined_call_operand.vmem [shape: f32[1,32], index: 16, kind: input, shape index: {}]   ;;  %s5371_s17 = inlined_call_operand.vmem [shape: f32[1,32], index: 17, kind: input, shape index: {}]   ;;  %s5372_s18 = inlined_call_operand.vmem [shape: f32[1,32], index: 18, kind: input, shape index: {}]   ;;  %s5373_s19 = inlined_call_operand.vmem [shape: f32[1,32], index: 19, kind: input, shape index: {}]   ;;  %s5374_s20 = inlined_call_operand.hbm [shape: f32[16,32], index: 20, kind: output, shape index: {}]  }
   0x1   :  { %5380 = sst [smem:[#allocation23_spill]] %s5354_s0 }
   0x2   :  { %5381 = sst [smem:[#allocation24_spill]] %s5355_s1  ;;  %s5386_s23 = sld [smem:[#allocation23_spill]] }
   0x3   :  { %5382 = sst [smem:[#allocation25_spill]] %s5356_s2 }
   0x4   :  { %5383 = sst [smem:[#allocation26_spill]] %s5357_s3 }
   0x5   :  { %5384 = sst [smem:[#allocation27_spill]] %s5358_s4 }
   0x6   :  { %5385 = sst [smem:[#allocation28_spill]] %s5367_s13 }
   0x8   :  { %s4387_s13 = scalar_lea.hbm %s5386_s23, 16 }
   0x9   :  { %p4388_p0 = scmp.ne.s32.totalorder %s5386_s23, %s4387_s13  ;;  %p4391_p1 = scmp.lt.u32.totalorder %s4387_s13, %s5386_s23 }
   0xb   :  { %p4393_p2 = pnand %p4391_p1, %p4388_p0 }
   0xd   :  { %4396 = shalt.err (!%p4393_p2)  }
   0xe   :  { %s4585_s26 = smov [#allocation3]  }
   0xf   :  { %26 = dma.hbm_to_smem %s5386_s23, 16, %s4585_s26, [#allocation2] }
  0x10   :  { %4573 = dma.done.wait [#allocation2], 16 }
  0x11   :  { %4574 = vsyncadd [#allocation2], 4294967280 }
  0x12   :  { %28 = sfence }
  0x13   :  { %29 = vsyncpa [#allocation5], 0 }
  0x14   :  { %30 = vsyncpa [#allocation8], 0 }
  0x15   :  { %31 = vsyncpa [#allocation11], 0 }
  0x16   :  { %32 = vsyncpa [#allocation14], 0 }
  0x17   :  { %33 = vsyncpa [#allocation6], 0  ;;  %s4586_s4 = smov [#allocation7]   ;;  %s4587_s30 = smov [#allocation10]  }
  0x18   :  { %s51_s29 = sshll.u32 %s4586_s4, 4  ;;  %s81_s0 = sshll.u32 %s4587_s30, 4  ;;  %s52_s29 = int_to_ptr.vmem [resolvable:$true] %s51_s29  ;;  %s4724_s0 = int_to_ptr.vmem [resolvable:$true] %s81_s0 }
  0x19   :  { %s5387_s1 = sld [smem:[#allocation25_spill]] }
  0x1f   :  { %s4397_s22 = scalar_lea.hbm %s5387_s1, 256 }
  0x20   :  { %p4398_p3 = scmp.ne.s32.totalorder %s5387_s1, %s4397_s22  ;;  %p4401_p4 = scmp.lt.u32.totalorder %s4397_s22, %s5387_s1 }
  0x22   :  { %p4403_p5 = pnand %p4401_p4, %p4398_p3 }
  0x24   :  { %4406 = shalt.err (!%p4403_p5)
}
  0x25   :  { %s4407_s3 = scalar_lea.vmem %s52_s29, 256  ;;  %p4412_p7 = scmp.lt.s32.totalorder %s52_s29, %s52_s29 }
  0x26   :  { %p4408_p6 = scmp.ne.s32.totalorder %s52_s29, %s4407_s3  ;;  %p4413_p8 = scmp.lt.s32.totalorder %s4407_s3, %s4407_s3 }
  0x28   :  { %p4414_p9 = por %p4413_p8, %p4412_p7 }
  0x2a   :  { %p4415_p10 = pnand %p4414_p9, %p4408_p6 }
  0x2c   :  { %4418 = shalt.err (!%p4415_p10)
}
  0x2d   :  { %s4588_s26 = smov 128   ;;  %s4589_s27 = smov 8  }
  0x2e   :  { %57 = dma.hbm_to_vmem [thread:$0]  %s5387_s1, 256, %s52_s29, [#allocation8], %s4588_s26, %s4588_s26, %s4589_s27  }
  0x2f   :  { %s4419_s21 = scalar_lea.hbm %s5361_s7, 512 }
  0x30   :  { %p4420_p11 = scmp.ne.s32.totalorder %s5361_s7, %s4419_s21  ;;  %p4423_p12 = scmp.lt.u32.totalorder %s4419_s21, %s5361_s7 }
  0x32   :  { %p4425_p13 = pnand %p4423_p12, %p4420_p11 }
  0x34   :  { %4428 = shalt.err (!%p4425_p13)
}
  0x35   :  { %s4429_s25 = scalar_lea.vmem %s4724_s0, 512  ;;  %p4434_p1 = scmp.lt.s32.totalorder %s4724_s0, %s4724_s0 }
  0x36   :  { %p4430_p0 = scmp.ne.s32.totalorder %s4724_s0, %s4429_s25  ;;  %p4435_p2 = scmp.lt.s32.totalorder %s4429_s25, %s4429_s25 }
  0x38   :  { %p4436_p3 = por %p4435_p2, %p4434_p1 }
  0x3a   :  { %p4437_p4 = pnand %p4436_p3, %p4430_p0 }
  0x3c   :  { %4440 = shalt.err (!%p4437_p4)
}
  0x3d   :  { %87 = dma.hbm_to_vmem [thread:$0]  %s5361_s7, 512, %s4724_s0, [#allocation11], %s4588_s26, %s4588_s26, %s4589_s27  }
  0x3e   :  { %s4590_s3 = smov [#allocation13]   ;;  %s4591_s4 = smov [#allocation4]  }
  0x3f   :  { %s105_s28 = sshll.u32 %s4590_s3, 4  ;;  %s39_s30 = sshll.u32 %s4591_s4, 4  ;;  %s106_s28 = int_to_ptr.vmem [resolvable:$true] %s105_s28  ;;  %s4761_s30 = int_to_ptr.vmem [resolvable:$true] %s39_s30 }
  0x40   :  { %s4441_s22 = scalar_lea.hbm %s5363_s9, 512 }
  0x41   :  { %p4442_p5 = scmp.ne.s32.totalorder %s5363_s9, %s4441_s22  ;;  %p4445_p6 = scmp.lt.u32.totalorder %s4441_s22, %s5363_s9 }
  0x43   :  { %p4447_p7 = pnand %p4445_p6, %p4442_p5 }
  0x45   :  { %4450 = shalt.err (!%p4447_p7)
}
  0x46   :  { %s4451_s7 = scalar_lea.vmem %s106_s28, 512  ;;  %p4456_p9 = scmp.lt.s32.totalorder %s106_s28, %s106_s28 }
  0x47   :  { %p4452_p8 = scmp.ne.s32.totalorder %s106_s28, %s4451_s7  ;;  %p4457_p10 = scmp.lt.s32.totalorder %s4451_s7, %s4451_s7 }
  0x49   :  { %p4458_p11 = por %p4457_p10, %p4456_p9 }
  0x4b   :  { %p4459_p12 = pnand %p4458_p11, %p4452_p8 }
  0x4d   :  { %4462 = shalt.err (!%p4459_p12)
}
  0x4e   :  { %111 = dma.hbm_to_vmem [thread:$0]  %s5363_s9, 512, %s106_s28, [#allocation14], %s4588_s26, %s4588_s26, %s4589_s27  }
  0x4f   :  { %s5388_s4 = sld [smem:[#allocation24_spill]] }
  0x55   :  { %s4463_s13 = scalar_lea.hbm %s5388_s4, 256 }
  0x56   :  { %p4464_p13 = scmp.ne.s32.totalorder %s5388_s4, %s4463_s13  ;;  %p4467_p0 = scmp.lt.u32.totalorder %s4463_s13, %s5388_s4 }
  0x58   :  { %p4469_p1 = pnand %p4467_p0, %p4464_p13 }
  0x5a   :  { %4472 = shalt.err (!%p4469_p1)
}
  0x5b   :  { %s4473_s2 = scalar_lea.vmem %s4761_s30, 256  ;;  %p4478_p3 = scmp.lt.s32.totalorder %s4761_s30, %s4761_s30 }
  0x5c   :  { %p4474_p2 = scmp.ne.s32.totalorder %s4761_s30, %s4473_s2  ;;  %p4479_p4 = scmp.lt.s32.totalorder %s4473_s2, %s4473_s2 }
  0x5e   :  { %p4480_p5 = por %p4479_p4, %p4478_p3 }
  0x60   :  { %p4481_p6 = pnand %p4480_p5, %p4474_p2 }
  0x62   :  { %4484 = shalt.err (!%p4481_p6)
}
  0x63   :  { %45 = dma.hbm_to_vmem [thread:$0]  %s5388_s4, 256, %s4761_s30, [#allocation5], %s4588_s26, %s4588_s26, %s4589_s27  }
  0x64   :  { %s4592_s25 = smov [#allocation9]   ;;  %s4593_s0 = smov [#allocation12]  }
  0x65   :  { %s63_s7 = sshll.u32 %s4592_s25, 4  ;;  %s93_s29 = sshll.u32 %s4593_s0, 4  ;;  %s64_s7 = int_to_ptr.vmem [resolvable:$true] %s63_s7  ;;  %s4798_s29 = int_to_ptr.vmem [resolvable:$true] %s93_s29 }
  0x66   :  { %s5389_s13 = sld [smem:[#allocation26_spill]] }
  0x6c   :  { %s4485_s21 = scalar_lea.hbm %s5389_s13, 256 }
  0x6d   :  { %p4486_p7 = scmp.ne.s32.totalorder %s5389_s13, %s4485_s21  ;;  %p4489_p8 = scmp.lt.u32.totalorder %s4485_s21, %s5389_s13 }
  0x6f   :  { %p4491_p9 = pnand %p4489_p8, %p4486_p7 }
  0x71   :  { %4494 = shalt.err (!%p4491_p9)
}
  0x72   :  { %s4495_s30 = scalar_lea.vmem %s64_s7, 256  ;;  %p4500_p11 = scmp.lt.s32.totalorder %s64_s7, %s64_s7 }
  0x73   :  { %p4496_p10 = scmp.ne.s32.totalorder %s64_s7, %s4495_s30  ;;  %p4501_p12 = scmp.lt.s32.totalorder %s4495_s30, %s4495_s30 }
  0x75   :  { %p4502_p13 = por %p4501_p12, %p4500_p11 }
  0x77   :  { %p4503_p0 = pnand %p4502_p13, %p4496_p10 }
  0x79   :  { %4506 = shalt.err (!%p4503_p0)
}
  0x7a   :  { %69 = dma.hbm_to_vmem [thread:$0]  %s5389_s13, 256, %s64_s7, [#allocation8], %s4588_s26, %s4588_s26, %s4589_s27  }
  0x7b   :  { %s4507_s0 = scalar_lea.hbm %s5362_s8, 512 }
  0x7c   :  { %p4508_p1 = scmp.ne.s32.totalorder %s5362_s8, %s4507_s0  ;;  %p4511_p2 = scmp.lt.u32.totalorder %s4507_s0, %s5362_s8 }
  0x7e   :  { %p4513_p3 = pnand %p4511_p2, %p4508_p1 }
  0x80   :  { %4516 = shalt.err (!%p4513_p3)
}
  0x81   :  { %s4517_s23 = scalar_lea.vmem %s4798_s29, 512  ;;  %p4522_p5 = scmp.lt.s32.totalorder %s4798_s29, %s4798_s29 }
  0x82   :  { %p4518_p4 = scmp.ne.s32.totalorder %s4798_s29, %s4517_s23  ;;  %p4523_p6 = scmp.lt.s32.totalorder %s4517_s23, %s4517_s23 }
  0x84   :  { %p4524_p7 = por %p4523_p6, %p4522_p5 }
  0x86   :  { %p4525_p8 = pnand %p4524_p7, %p4518_p4 }
  0x88   :  { %4528 = shalt.err (!%p4525_p8)
}
  0x89   :  { %99 = dma.hbm_to_vmem [thread:$0]  %s5362_s8, 512, %s4798_s29, [#allocation11], %s4588_s26, %s4588_s26, %s4589_s27  }
  0x8a   :  { %s4594_s24 = smov [#allocation15]   ;;  %s4529_s9 = scalar_lea.hbm %s5364_s10, 512 }
  0x8b   :  { %s117_s2 = sshll.u32 %s4594_s24, 4  ;;  %p4530_p9 = scmp.ne.s32.totalorder %s5364_s10, %s4529_s9  ;;  %s118_s2 = int_to_ptr.vmem [resolvable:$true] %s117_s2 }
  0x8c   :  { %p4533_p10 = scmp.lt.u32.totalorder %s4529_s9, %s5364_s10 }
  0x8e   :  { %p4535_p11 = pnand %p4533_p10, %p4530_p9 }
  0x90   :  { %4538 = shalt.err (!%p4535_p11)
}
  0x91   :  { %s4539_s3 = scalar_lea.vmem %s118_s2, 512  ;;  %p4544_p13 = scmp.lt.s32.totalorder %s118_s2, %s118_s2 }
  0x92   :  { %p4540_p12 = scmp.ne.s32.totalorder %s118_s2, %s4539_s3  ;;  %p4545_p0 = scmp.lt.s32.totalorder %s4539_s3, %s4539_s3 }
  0x94   :  { %p4546_p1 = por %p4545_p0, %p4544_p13 }
  0x96   :  { %p4547_p2 = pnand %p4546_p1, %p4540_p12 }
  0x98   :  { %4550 = shalt.err (!%p4547_p2)
}
  0x99   :  { %123 = dma.hbm_to_vmem [thread:$0]  %s5364_s10, 512, %s118_s2, [#allocation14], %s4588_s26, %s4588_s26, %s4589_s27  }
  0x9a   :  { %4575 = dma.done.wait [#allocation5], 256  }
  0x9b   :  { %4576 = vsyncadd [#allocation5], 4294967040 }
  0x9c   :  { %4577 = dma.done.wait [#allocation8], 512  }
  0x9d   :  { %4578 = vsyncadd [#allocation8], 4294966784 }
  0x9e   :  { %4579 = dma.done.wait [#allocation11], 1024  }
  0x9f   :  { %4580 = vsyncadd [#allocation11], 4294966272 }
  0xa0   :  { %4581 = dma.done.wait [#allocation14], 1024  }
  0xa1   :  { %4582 = vsyncadd [#allocation14], 4294966272  ;;  %vm194_vm0 = vcmask 261120   ;;  %s5390_s23 = sld [smem:[#allocation27_spill]]  ;;  %v4862_v5 = vld [vmem:[#allocation4] sm:$0xff]  ;;  %v187_v8 = vld [vmem:[%s5359_s5 + $0x8] sm:$0xff]  ;;  %v169_v34 = vlaneseq }
  0xa2   :  { %3969 = vmatprep.mubr.msk.f32.mxu1 %vm194_vm0, %v4862_v5  ;;  %v186_v7 = vld [vmem:[%s5359_s5] sm:$0xff]  ;;  %v188_v10 = vld [vmem:[%s5359_s5 + $0x10] sm:$0xff]  ;;  %v189_v11 = vld [vmem:[%s5359_s5 + $0x18] sm:$0xff]  ;;  %v4595_v16 = vmov 0.0   ;;  %vm4596_vm1 = vmmov 0   ;;  %vm357_vm2 = vcmask 64512  }
  0xa3   :  { %v4225_v9 = vpack.c.bf16 %v187_v8, %v186_v7  ;;  %v4878_v12 = vld [vmem:[#allocation4 + $0x8] sm:$0xff]  ;;  %v4229_v13 = vpack.c.bf16 %v189_v11, %v188_v10  ;;  %v165_v14 = vld [vmem:[#allocation7] sm:$0xff]  ;;  %v166_v15 = vld [vmem:[#allocation7 + $0x8] sm:$0xff]  ;;  %3983 = vmatprep.subr.mxu0 %v4595_v16  ;;  %3985 = vmatprep.mubr.msk.f32.mxu0 %vm4596_vm1, %v4595_v16  ;;  %s4597_s5 = smov 112   ;;  %s4598_s29 = smov 120   ;;  %v170_v35 = vshrl.u32 %v169_v34, 7 }
  0xa4   :  { %s4599_s21 = smov 104   ;;  %s4600_s22 = smov 88   ;;  %v4956_v36 = vand.u32 127, %v169_v34  ;;  %vm1037_vm4 = vcmask 130048   ;;  %vm1039_vm5 = vcmask 195584   ;;  %vm3622_vm8 = vcmask 523264  }
  0xa5   :  { %s4602_s7 = smov 72   ;;  %s4603_s13 = smov 80  }
  0xa6   :  { %vm4959_vm3 = vcmp.le.s32.totalorder %v4956_v36, %v170_v35  ;;  %s4604_s24 = smov 16   ;;  %s4605_s30 = smov 24  }
  0xa7   :  { %v182_v0 = vld [vmem:[%s5390_s23] sm:$0xff]  ;;  %v183_v1 = vld [vmem:[%s5390_s23 + $0x8] sm:$0xff]  ;;  %v184_v2 = vld [vmem:[%s5390_s23 + $0x10] sm:$0xff] }
  0xa8   :  { %v4217_v3 = vpack.c.bf16 %v183_v1, %v182_v0  ;;  %v185_v4 = vld [vmem:[%s5390_s23 + $0x18] sm:$0xff]  ;;  %s4601_s23 = smov 96  }
  0xa9   :  { %v4221_v6 = vpack.c.bf16 %v185_v4, %v184_v2 }
  0xaa   :  { %4218 = vmatprep.subr.bf16.mxu1 %v4217_v3 }
  0xab   :  { %4220 = vmatpush3.bf16.msra.mxu1 %v4217_v3 }
  0xac   :  { %4222 = vmatprep.subr.bf16.mxu1 %v4221_v6 }
  0xaf   :  { %4224 = vmatpush3.bf16.msra.mxu1 %v4221_v6 }
  0xb0   :  { %4226 = vmatprep.subr.bf16.mxu1 %v4225_v9 }
  0xb2   :  { %3970 = vmatmul.mubr.msk.f32.vlgmr.msra.gmra.mrb[0].mxu1 %vm194_vm0, %v4878_v12 }
  0xb3   :  { %4228 = vmatpush3.bf16.msra.mxu1 %v4225_v9  ;;  %3980 = vmatprep.mubr.msk.f32.mxu1 %vm194_vm0, %v165_v14 }
  0xb4   :  { %4230 = vmatprep.subr.bf16.mxu1 %v4229_v13 }
  0xb7   :  { %4232 = vmatpush3.bf16.msra.mxu1 %v4229_v13 }
  0xb8   :  { %3988 = vmatprep.subr.mxu1 %v4595_v16 }
  0xba   :  { %3981 = vmatmul.mubr.msk.f32.vlgmr.msra.gmra.mrb[2].mxu1 %vm194_vm0, %v166_v15 }
  0xbb   :  { %3990 = vmatprep.mubr.msk.f32.mxu1 %vm4596_vm1, %v4595_v16 }
 0x185   :  { %v3971_v17 = vpop.f32.mrb[0].mxu1 }
 0x186   :  { %v267_v18 = vpop.f32.mrb[1].mxu1 }
 0x18d   :  { %v4890_v19 = vpop.f32.mrb[2].mxu1 }
 0x18e   :  { %v4892_v20 = vpop.f32.mrb[3].mxu1 }
 0x18f   :  { %692 = vrot.lane.b32.xlu1 %v4892_v20, %s4597_s5  ;;  %525 = vrot.lane.b32.xlu0 %v4892_v20, %s4598_s29 }
 0x190   :  { %3984 = vmatpush3.xpose.msk.msra.mxu0 %vm357_vm2, %v4892_v20 }
 0x191   :  { %3993 = vmatprep.subr.mxu0 %v4595_v16 }
 0x193   :  { %3986 = vmatmul.mubr.msk.f32.vlgmr.msra.gmra.mrb[0].mxu0 %vm357_vm2, %v267_v18  ;;  %690 = vrot.lane.b32.xlu1 %v267_v18, %s4597_s5 }
 0x194   :  { %523 = vrot.lane.b32.xlu0 %v267_v18, %s4598_s29  ;;  %3995 = vmatprep.mubr.msk.f32.mxu0 %vm4596_vm1, %v4595_v16 }
 0x197   :  { %857 = vrot.lane.b32.xlu1 %v267_v18, %s4599_s21 }
 0x198   :  { %859 = vrot.lane.b32.xlu0 %v4892_v20, %s4599_s21 }
 0x19b   :  { %1206 = vrot.lane.b32.xlu1 %v3971_v17, %s4598_s29 }
 0x19c   :  { %1208 = vrot.lane.b32.xlu0 %v4890_v19, %s4598_s29 }
 0x19f   :  { %1373 = vrot.lane.b32.xlu1 %v3971_v17, %s4597_s5 }
 0x1a0   :  { %1375 = vrot.lane.b32.xlu0 %v4890_v19, %s4597_s5 }
 0x1a3   :  { %1540 = vrot.lane.b32.xlu1 %v3971_v17, %s4599_s21 }
 0x1a4   :  { %1542 = vrot.lane.b32.xlu0 %v4890_v19, %s4599_s21 }
 0x1a7   :  { %614 = vrot.lane.b32.xlu1 %v4892_v20, %s4600_s22 }
 0x1a8   :  { %447 = vrot.lane.b32.xlu0 %v4892_v20, %s4601_s23 }
 0x201   :  { %v693_v21 = vpop.permute.xlu1 %692  ;;  %v526_v22 = vpop.permute.xlu0 %525 }
 0x202   :  { %3994 = vmatpush3.xpose.msk.msra.mxu0 %vm357_vm2, %v526_v22 }
 0x203   :  { %4003 = vmatprep.subr.mxu0 %v4595_v16 }
 0x205   :  { %v691_v23 = vpop.permute.xlu1 %690 }
 0x206   :  { %v524_v24 = vpop.permute.xlu0 %523 }
 0x207   :  { %3996 = vmatmul.mubr.msk.f32.vlgmr.msra.gmra.mrb[2].mxu0 %vm357_vm2, %v524_v24 }
 0x208   :  { %4004 = vmatpush3.xpose.msk.msra.mxu0 %vm357_vm2, %v693_v21  ;;  %4005 = vmatprep.mubr.msk.f32.mxu0 %vm4596_vm1, %v4595_v16 }
 0x209   :  { %4013 = vmatprep.subr.mxu0 %v4595_v16  ;;  %v858_v26 = vpop.permute.xlu1 %857 }
 0x20a   :  { %v860_v25 = vpop.permute.xlu0 %859 }
 0x20b   :  { %4006 = vmatmul.mubr.msk.f32.vlgmr.msra.gmra.mrb[4].mxu0 %vm357_vm2, %v691_v23 }
 0x20c   :  { %4014 = vmatpush3.xpose.msk.msra.mxu0 %vm357_vm2, %v860_v25  ;;  %4015 = vmatprep.mubr.msk.f32.mxu0 %vm4596_vm1, %v4595_v16 }
 0x20d   :  { %4023 = vmatprep.subr.mxu0 %v4595_v16  ;;  %v1207_v28 = vpop.permute.xlu1 %1206 }
 0x20e   :  { %v1209_v27 = vpop.permute.xlu0 %1208 }
 0x20f   :  { %4016 = vmatmul.mubr.msk.f32.vlgmr.msra.gmra.mrb[6].mxu0 %vm357_vm2, %v858_v26 }
 0x210   :  { %4024 = vmatpush3.xpose.msk.msra.mxu0 %vm357_vm2, %v4890_v19  ;;  %4025 = vmatprep.mubr.msk.f32.mxu0 %vm4596_vm1, %v4595_v16 }
 0x211   :  { %4033 = vmatprep.subr.mxu0 %v4595_v16  ;;  %v1374_v31 = vpop.permute.xlu1 %1373 }
 0x212   :  { %v1376_v29 = vpop.permute.xlu0 %1375 }
 0x213   :  { %4026 = vmatmul.mubr.msk.f32.vlgmr.msra.gmra.mrb[8].mxu0 %vm357_vm2, %v3971_v17 }
 0x214   :  { %4034 = vmatpush3.xpose.msk.msra.mxu0 %vm357_vm2, %v1209_v27  ;;  %4035 = vmatprep.mubr.msk.f32.mxu0 %vm4596_vm1, %v4595_v16 }
 0x215   :  { %4043 = vmatprep.subr.mxu0 %v4595_v16  ;;  %v1541_v33 = vpop.permute.xlu1 %1540 }
 0x216   :  { %v1543_v30 = vpop.permute.xlu0 %1542 }
 0x217   :  { %4036 = vmatmul.mubr.msk.f32.vlgmr.msra.gmra.mrb[10].mxu0 %vm357_vm2, %v1207_v28 }
 0x218   :  { %4044 = vmatpush3.xpose.msk.msra.mxu0 %vm357_vm2, %v1376_v29  ;;  %4045 = vmatprep.mubr.msk.f32.mxu0 %vm4596_vm1, %v4595_v16 }
 0x219   :  { %4053 = vmatprep.subr.mxu0 %v4595_v16  ;;  %v615_v24 = vpop.permute.xlu1 %614 }
 0x21a   :  { %v448_v32 = vpop.permute.xlu0 %447 }
 0x21b   :  { %3989 = vmatpush3.msra.mxu1 %v448_v32  ;;  %4046 = vmatmul.mubr.msk.f32.vlgmr.msra.gmra.mrb[12].mxu0 %vm357_vm2, %v1374_v31 }
 0x21c   :  { %4054 = vmatpush3.xpose.msk.msra.mxu0 %vm357_vm2, %v1543_v30  ;;  %4055 = vmatprep.mubr.msk.f32.mxu0 %vm4596_vm1, %v4595_v16 }
 0x21d   :  { %3998 = vmatprep.subr.mxu1 %v4595_v16 }
 0x21f   :  { %4056 = vmatmul.mubr.msk.f32.vlgmr.msra.gmra.mrb[14].mxu0 %vm357_vm2, %v1541_v33 }
 0x266   :  { %v430_v37 = vpop.f32.mrb[0].mxu0 }
 0x267   :  { %v434_v39 = vmul.f32 0.35355338, %v430_v37  ;;  %v3987_v40 = vpop.f32.mrb[1].mxu0 }
 0x269   :  { %v435_v41 = vsel %vm4959_vm3, %v434_v39, -1000000.0 }
 0x26a   :  { %v436_v42 = vsel %vm357_vm2, %v435_v41, -inf }
 0x26b   :  { %437 = vmax.xlane.f32.xlu0 %v436_v42 }
 0x2da   :  { %v597_v43 = vpop.f32.mrb[2].mxu0 }
 0x2db   :  { %v601_v44 = vmul.f32 0.35355338, %v597_v43  ;;  %v3997_v45 = vpop.f32.mrb[3].mxu0 }
 0x2dd   :  { %v602_v46 = vsel %vm4959_vm3, %v601_v44, -1000000.0 }
 0x2de   :  { %v764_v47 = vpop.f32.mrb[4].mxu0  ;;  %v603_v48 = vsel %vm357_vm2, %v602_v46, -inf }
 0x2df   :  { %v768_v49 = vmul.f32 0.35355338, %v764_v47  ;;  %604 = vmax.xlane.f32.xlu1 %v603_v48  ;;  %v4007_v50 = vpop.f32.mrb[5].mxu0 }
 0x2e1   :  { %v769_v51 = vsel %vm4959_vm3, %v768_v49, -1000000.0 }
 0x2e2   :  { %v931_v52 = vpop.f32.mrb[6].mxu0  ;;  %v770_v53 = vsel %vm357_vm2, %v769_v51, -inf }
 0x2e3   :  { %v935_v54 = vmul.f32 0.35355338, %v931_v52  ;;  %771 = vmax.xlane.f32.xlu0 %v770_v53  ;;  %v4017_v55 = vpop.f32.mrb[7].mxu0 }
 0x2e5   :  { %v936_v56 = vsel %vm4959_vm3, %v935_v54, -1000000.0 }
 0x2e6   :  { %v1113_v57 = vpop.f32.mrb[8].mxu0  ;;  %v937_v58 = vsel %vm357_vm2, %v936_v56, -inf }
 0x2e7   :  { %v1117_v59 = vmul.f32 0.35355338, %v1113_v57  ;;  %938 = vmax.xlane.f32.xlu0 %v937_v58  ;;  %v4027_v60 = vpop.f32.mrb[9].mxu0 }
 0x2e9   :  { %v1118_v61 = vsel %vm4959_vm3, %v1117_v59, -1000000.0 }
 0x2ea   :  { %v1280_v62 = vpop.f32.mrb[10].mxu0  ;;  %v1119_v63 = vsel %vm357_vm2, %v1118_v61, -inf }
 0x2eb   :  { %v1284_v0 = vmul.f32 0.35355338, %v1280_v62  ;;  %1120 = vmax.xlane.f32.xlu1 %v1119_v63  ;;  %v4037_v1 = vpop.f32.mrb[11].mxu0 }
 0x2ed   :  { %v1285_v2 = vsel %vm4959_vm3, %v1284_v0, -1000000.0 }
 0x2ee   :  { %v1447_v3 = vpop.f32.mrb[12].mxu0  ;;  %v1286_v4 = vsel %vm357_vm2, %v1285_v2, -inf }
 0x2ef   :  { %v1451_v6 = vmul.f32 0.35355338, %v1447_v3  ;;  %1287 = vmax.xlane.f32.xlu0 %v1286_v4  ;;  %v4047_v7 = vpop.f32.mrb[13].mxu0 }
 0x2f1   :  { %v1452_v8 = vsel %vm4959_vm3, %v1451_v6, -1000000.0 }
 0x2f2   :  { %v1614_v9 = vpop.f32.mrb[14].mxu0  ;;  %v1453_v10 = vsel %vm357_vm2, %v1452_v8, -inf }
 0x2f3   :  { %v1618_v11 = vmul.f32 0.35355338, %v1614_v9  ;;  %1454 = vmax.xlane.f32.xlu1 %v1453_v10  ;;  %v4057_v13 = vpop.f32.mrb[15].mxu0 }
 0x2f5   :  { %v1619_v14 = vsel %vm4959_vm3, %v1618_v11, -1000000.0 }
 0x2f6   :  { %v1620_v15 = vsel %vm357_vm2, %v1619_v14, -inf }
 0x2f7   :  { %1621 = vmax.xlane.f32.xlu0 %v1620_v15 }
 0x2f8   :  { %v438_v17 = vpop.xlane.xlu0 %437 }
 0x2f9   :  { %v439_v18 = vsub.f32 %v435_v41, %v438_v17 }
 0x2fb   :  { %v440_v21 = vmul.f32 1.442695, %v439_v18 }
 0x2fd   :  { %4311 = vpow2.f32 %v440_v21 }
 0x304   :  { %948 = vrot.lane.b32.xlu1 %v4892_v20, %s4602_s7 }
 0x307   :  { %v4312_v22 = vpop.eup %4311 }
 0x308   :  { %v442_v23 = vsel %vm357_vm2, %v4312_v22, 0.0 }
 0x30d   :  { %781 = vrot.lane.b32.xlu0 %v4892_v20, %s4603_s13 }
 0x328   :  { %443 = vadd.xlane.f32.xlu1 %v442_v23 }
 0x36c   :  { %v605_v25 = vpop.xlane.xlu1 %604 }
 0x36d   :  { %v606_v26 = vsub.f32 %v602_v46, %v605_v25 }
 0x36f   :  { %v607_v27 = vmul.f32 1.442695, %v606_v26 }
 0x370   :  { %v772_v28 = vpop.xlane.xlu0 %771 }
 0x371   :  { %4313 = vpow2.f32 %v607_v27  ;;  %v773_v29 = vsub.f32 %v769_v51, %v772_v28 }
 0x373   :  { %v774_v30 = vmul.f32 1.442695, %v773_v29 }
 0x374   :  { %v939_v31 = vpop.xlane.xlu0 %938 }
 0x375   :  { %4315 = vpow2.f32 %v774_v30  ;;  %v940_v32 = vsub.f32 %v936_v56, %v939_v31 }
 0x377   :  { %v941_v20 = vmul.f32 1.442695, %v940_v32 }
 0x378   :  { %v1121_v40 = vpop.xlane.xlu1 %1120 }
 0x379   :  { %4317 = vpow2.f32 %v941_v20  ;;  %v1122_v41 = vsub.f32 %v1118_v61, %v1121_v40 }
 0x37b   :  { %v4314_v33 = vpop.eup %4313  ;;  %v1123_v45 = vmul.f32 1.442695, %v1122_v41  ;;  %v192_v41 = vld [vmem:[%s5360_s6 + $0x10] sm:$0xff] }
 0x37c   :  { %v609_v34 = vsel %vm357_vm2, %v4314_v33, 0.0  ;;  %v1288_v42 = vpop.xlane.xlu0 %1287 }
 0x37d   :  { %610 = vadd.xlane.f32.xlu0 %v609_v34  ;;  %v1289_v44 = vsub.f32 %v1285_v2, %v1288_v42  ;;  %4319 = vpow2.f32 %v1123_v45  ;;  %v193_v42 = vld [vmem:[%s5360_s6 + $0x18] sm:$0xff] }
 0x37f   :  { %v4316_v35 = vpop.eup %4315  ;;  %v1290_v48 = vmul.f32 1.442695, %v1289_v44 }
 0x380   :  { %v776_v37 = vsel %vm357_vm2, %v4316_v35, 0.0  ;;  %v1455_v43 = vpop.xlane.xlu1 %1454 }
 0x381   :  { %777 = vadd.xlane.f32.xlu1 %v776_v37  ;;  %v1456_v46 = vsub.f32 %v1452_v8, %v1455_v43  ;;  %4321 = vpow2.f32 %v1290_v48  ;;  %v4237_v43 = vpack.c.bf16 %v193_v42, %v192_v41  ;;  %v3804_v41 = vld [vmem:[%s5369_s15] ss:$0 sm:$0xff]  ;;  %s3772_s15 = sld [smem:[#allocation3 + $0x1]] }
 0x383   :  { %v4994_v38 = vpop.eup %4317  ;;  %v1457_v49 = vmul.f32 1.442695, %v1456_v46 }
 0x384   :  { %v943_v39 = vsel %vm357_vm2, %v4994_v38, 0.0  ;;  %v1622_v47 = vpop.xlane.xlu0 %1621  ;;  %v949_v52 = vpop.permute.xlu1 %948 }
 0x385   :  { %944 = vadd.xlane.f32.xlu0 %v943_v39  ;;  %v1623_v50 = vsub.f32 %v1619_v14, %v1622_v47  ;;  %4323 = vpow2.f32 %v1457_v49  ;;  %v191_v39 = vld [vmem:[%s5360_s6 + $0x8] sm:$0xff] }
 0x387   :  { %v1624_v51 = vmul.f32 1.442695, %v1623_v50  ;;  %v4320_v53 = vpop.eup %4319 }
 0x388   :  { %v1125_v56 = vsel %vm357_vm2, %v4320_v53, 0.0  ;;  %v782_v0 = vpop.permute.xlu0 %781 }
 0x389   :  { %4325 = vpow2.f32 %v1624_v51 }
 0x38b   :  { %v5002_v54 = vpop.eup %4321 }
 0x38c   :  { %v1292_v59 = vsel %vm357_vm2, %v5002_v54, 0.0 }
 0x38f   :  { %v5005_v57 = vpop.eup %4323 }
 0x390   :  { %v1459_v58 = vsel %vm357_vm2, %v5005_v57, 0.0 }
 0x392   :  { %1297 = vrot.lane.b32.xlu1 %v4890_v19, %s4600_s22 }
 0x393   :  { %v5011_v60 = vpop.eup %4325 }
 0x394   :  { %v1626_v61 = vsel %vm357_vm2, %v5011_v60, 0.0 }
 0x39b   :  { %1130 = vrot.lane.b32.xlu0 %v4890_v19, %s4601_s23 }
 0x3b5   :  { %v444_v55 = vpop.xlane.xlu1 %443 }
 0x3b6   :  { %4327 = vrcp.f32 %v444_v55  ;;  %1126 = vadd.xlane.f32.xlu1 %v1125_v56 }
 0x3ba   :  { %1460 = vadd.xlane.f32.xlu1 %v1459_v58  ;;  %1293 = vadd.xlane.f32.xlu0 %v1292_v59 }
 0x3be   :  { %1627 = vadd.xlane.f32.xlu1 %v1626_v61 }
 0x3c0   :  { %v4328_v62 = vpop.eup %4327 }
 0x3c1   :  { %v446_v63 = vmul.f32 %v4328_v62, %v4312_v22 }
 0x3c3   :  { %3991 = vmatmul.mubr.msk.f32.vlgmr.msra.gmra.mrb[4].mxu1 %vm357_vm2, %v446_v63 }
 0x3c4   :  { %3999 = vmatpush3.msra.mxu1 %v615_v24  ;;  %4000 = vmatprep.mubr.msk.f32.mxu1 %vm4596_vm1, %v4595_v16 }
 0x3c5   :  { %4008 = vmatprep.subr.mxu1 %v4595_v16 }
 0x3cf   :  { %1631 = vrot.lane.b32.xlu1 %v4890_v19, %s4602_s7 }
 0x3d0   :  { %1464 = vrot.lane.b32.xlu0 %v4890_v19, %s4603_s13 }
 0x40a   :  { %v611_v1 = vpop.xlane.xlu0 %610 }
 0x40b   :  { %4329 = vrcp.f32 %v611_v1 }
 0x40e   :  { %v778_v2 = vpop.xlane.xlu1 %777 }
 0x40f   :  { %4331 = vrcp.f32 %v778_v2 }
 0x412   :  { %v945_v3 = vpop.xlane.xlu0 %944  ;;  %v1298_v11 = vpop.permute.xlu1 %1297 }
 0x413   :  { %4333 = vrcp.f32 %v945_v3 }
 0x415   :  { %v4330_v4 = vpop.eup %4329 }
 0x416   :  { %v613_v6 = vmul.f32 %v4330_v4, %v4314_v33  ;;  %v1131_v10 = vpop.permute.xlu0 %1130 }
 0x418   :  { %4001 = vmatmul.mubr.msk.f32.vlgmr.msra.gmra.mrb[6].mxu1 %vm357_vm2, %v613_v6 }
 0x419   :  { %v4332_v7 = vpop.eup %4331  ;;  %4009 = vmatpush3.msra.mxu1 %v782_v0  ;;  %4010 = vmatprep.mubr.msk.f32.mxu1 %vm4596_vm1, %v4595_v16 }
 0x41a   :  { %v780_v8 = vmul.f32 %v4332_v7, %v4316_v35  ;;  %4018 = vmatprep.subr.mxu1 %v4595_v16 }
 0x41c   :  { %4011 = vmatmul.mubr.msk.f32.vlgmr.msra.gmra.mrb[8].mxu1 %vm357_vm2, %v780_v8 }
 0x41d   :  { %v4334_v19 = vpop.eup %4333  ;;  %4019 = vmatpush3.msra.mxu1 %v949_v52  ;;  %4020 = vmatprep.mubr.msk.f32.mxu1 %vm4596_vm1, %v4595_v16 }
 0x41e   :  { %v947_v9 = vmul.f32 %v4334_v19, %v4994_v38  ;;  %4028 = vmatprep.subr.mxu1 %v4595_v16  ;;  %v190_v38 = vld [vmem:[%s5360_s6] sm:$0xff] }
 0x41f   :  { %v4233_v40 = vpack.c.bf16 %v191_v39, %v190_v38  ;;  %v3803_v39 = vld [vmem:[%s5368_s14] ss:$0 sm:$0xff]  ;;  %s175_s14 = sld [smem:[#allocation3]] }
 0x420   :  { %4021 = vmatmul.mubr.msk.f32.vlgmr.msra.gmra.mrb[10].mxu1 %vm357_vm2, %v947_v9 }
 0x421   :  { %4029 = vmatpush3.msra.mxu1 %v1131_v10  ;;  %4030 = vmatprep.mubr.msk.f32.mxu1 %vm4596_vm1, %v4595_v16 }
 0x422   :  { %4038 = vmatprep.subr.mxu1 %v4595_v16  ;;  %4234 = vmatprep.subr.bf16.mxu0 %v4233_v40 }
 0x423   :  { %4236 = vmatpush3.bf16.msra.mxu0 %v4233_v40 }
 0x424   :  { %4238 = vmatprep.subr.bf16.mxu0 %v4237_v43 }
 0x427   :  { %4240 = vmatpush3.bf16.msra.mxu0 %v4237_v43 }
 0x443   :  { %v1127_v13 = vpop.xlane.xlu1 %1126 }
 0x444   :  { %4335 = vrcp.f32 %v1127_v13 }
 0x447   :  { %v1461_v14 = vpop.xlane.xlu1 %1460  ;;  %v1294_v15 = vpop.xlane.xlu0 %1293 }
 0x448   :  { %4337 = vrcp.f32 %v1294_v15 }
 0x449   :  { %4339 = vrcp.f32 %v1461_v14 }
 0x44b   :  { %v1628_v17 = vpop.xlane.xlu1 %1627  ;;  %v1465_v25 = vpop.permute.xlu0 %1464 }
 0x44c   :  { %4341 = vrcp.f32 %v1628_v17  ;;  %v1855_v17 = vld [vmem:[#allocation12 + $0x8] sm:$0xff] }
 0x44e   :  { %v4336_v18 = vpop.eup %4335 }
 0x44f   :  { %v1129_v21 = vmul.f32 %v4336_v18, %v4320_v53  ;;  %v1632_v28 = vpop.permute.xlu1 %1631 }
 0x451   :  { %4031 = vmatmul.mubr.msk.f32.vlgmr.msra.gmra.mrb[12].mxu1 %vm357_vm2, %v1129_v21  ;;  %v1856_v21 = vld [vmem:[#allocation12 + $0x10] sm:$0xff] }
 0x452   :  { %4039 = vmatpush3.msra.mxu1 %v1298_v11  ;;  %4040 = vmatprep.mubr.msk.f32.mxu1 %vm4596_vm1, %v4595_v16  ;;  %v4338_v22 = vpop.eup %4337 }
 0x453   :  { %4048 = vmatprep.subr.mxu1 %v4595_v16  ;;  %v1296_v23 = vmul.f32 %v4338_v22, %v5002_v54  ;;  %v4340_v24 = vpop.eup %4339  ;;  %v1857_v22 = vld [vmem:[#allocation12 + $0x18] sm:$0xff] }
 0x454   :  { %v1463_v26 = vmul.f32 %v4340_v24, %v5005_v57  ;;  %v167_v24 = vld [vmem:[#allocation9] sm:$0xff] }
 0x455   :  { %4041 = vmatmul.mubr.msk.f32.vlgmr.msra.gmra.mrb[14].mxu1 %vm357_vm2, %v1296_v23  ;;  %v4253_v23 = vpack.c.bf16 %v1857_v22, %v1856_v21 }
 0x456   :  { %4049 = vmatpush3.msra.mxu1 %v1465_v25  ;;  %4050 = vmatprep.mubr.msk.f32.mxu1 %vm4596_vm1, %v4595_v16  ;;  %v4342_v27 = vpop.eup %4341  ;;  %v1850_v25 = vld [vmem:[#allocation10] sm:$0xff] }
 0x457   :  { %4058 = vmatprep.subr.mxu1 %v4595_v16  ;;  %v1630_v29 = vmul.f32 %v4342_v27, %v5011_v60  ;;  %v168_v27 = vld [vmem:[#allocation9 + $0x8] sm:$0xff] }
 0x459   :  { %4051 = vmatmul.mubr.msk.f32.vlgmr.msra.gmra.mrb[16].mxu1 %vm357_vm2, %v1463_v26  ;;  %v1851_v26 = vld [vmem:[#allocation10 + $0x8] sm:$0xff] }
 0x45a   :  { %4059 = vmatpush3.msra.mxu1 %v1632_v28  ;;  %4060 = vmatprep.mubr.msk.f32.mxu1 %vm4596_vm1, %v4595_v16  ;;  %v4241_v28 = vpack.c.bf16 %v1851_v26, %v1850_v25 }
 0x45c   :  { %4242 = vmatprep.subr.bf16.mxu1 %v4241_v28 }
 0x45d   :  { %4061 = vmatmul.mubr.msk.f32.vlgmr.msra.gmra.mrb[18].mxu1 %vm357_vm2, %v1630_v29  ;;  %v1852_v29 = vld [vmem:[#allocation10 + $0x10] sm:$0xff] }
 0x45e   :  { %4244 = vmatpush3.bf16.msra.mxu1 %v4241_v28 }
 0x496   :  { %v519_v30 = vpop.f32.mrb[4].mxu1 }
 0x497   :  { %v3992_v31 = vpop.f32.mrb[5].mxu1 }
 0x4eb   :  { %v686_v32 = vpop.f32.mrb[6].mxu1 }
 0x4ec   :  { %1025 = vrot.lane.b32.xlu0 %v686_v32, %s4589_s27  ;;  %v4002_v20 = vpop.f32.mrb[7].mxu1 }
 0x4ef   :  { %v853_v33 = vpop.f32.mrb[8].mxu1 }
 0x4f0   :  { %1029 = vrot.lane.b32.xlu1 %v853_v33, %s4604_s24  ;;  %v4012_v34 = vpop.f32.mrb[9].mxu1 }
 0x4f3   :  { %v1020_v35 = vpop.f32.mrb[10].mxu1 }
 0x4f4   :  { %1033 = vrot.lane.b32.xlu1 %v1020_v35, %s4605_s30  ;;  %v4022_v37 = vpop.f32.mrb[11].mxu1 }
 0x524   :  { %v1202_v44 = vpop.f32.mrb[12].mxu1 }
 0x525   :  { %v4032_v45 = vpop.f32.mrb[13].mxu1 }
 0x528   :  { %v1369_v46 = vpop.f32.mrb[14].mxu1 }
 0x529   :  { %1708 = vrot.lane.b32.xlu0 %v1369_v46, %s4589_s27  ;;  %v4042_v47 = vpop.f32.mrb[15].mxu1 }
 0x52c   :  { %v1536_v48 = vpop.f32.mrb[16].mxu1 }
 0x52d   :  { %1712 = vrot.lane.b32.xlu0 %v1536_v48, %s4604_s24  ;;  %v4052_v49 = vpop.f32.mrb[17].mxu1 }
 0x530   :  { %v1703_v50 = vpop.f32.mrb[18].mxu1 }
 0x531   :  { %1716 = vrot.lane.b32.xlu1 %v1703_v50, %s4605_s30  ;;  %v4062_v51 = vpop.f32.mrb[19].mxu1 }
 0x55e   :  { %v1026_v52 = vpop.permute.xlu0 %1025 }
 0x55f   :  { %v1036_v54 = vsel %vm357_vm2, %v519_v30, %v1026_v52  ;;  %v1853_v30 = vld [vmem:[#allocation10 + $0x18] sm:$0xff] }
 0x560   :  { %v4245_v31 = vpack.c.bf16 %v1853_v30, %v1852_v29 }
 0x562   :  { %v1030_v53 = vpop.permute.xlu1 %1029  ;;  %4246 = vmatprep.subr.bf16.mxu1 %v4245_v31 }
 0x563   :  { %v1038_v55 = vsel %vm1037_vm4, %v1036_v54, %v1030_v53  ;;  %4248 = vmatpush3.bf16.msra.mxu1 %v4245_v31 }
 0x564   :  { %4096 = vmatprep.subr.mxu1 %v4595_v16 }
 0x566   :  { %v1034_v56 = vpop.permute.xlu1 %1033 }
 0x567   :  { %v1040_v57 = vsel %vm1039_vm5, %v1038_v55, %v1034_v56 }
 0x568   :  { %4071 = vmatprep.mubr.msk.f32.mxu0 %vm194_vm0, %v1040_v57 }
 0x59b   :  { %v1709_v58 = vpop.permute.xlu0 %1708 }
 0x59c   :  { %v1719_v60 = vsel %vm357_vm2, %v1202_v44, %v1709_v58 }
 0x59f   :  { %v1713_v59 = vpop.permute.xlu0 %1712 }
 0x5a0   :  { %v1720_v61 = vsel %vm1037_vm4, %v1719_v60, %v1713_v59 }
 0x5a3   :  { %v1717_v62 = vpop.permute.xlu1 %1716 }
 0x5a4   :  { %v1721_v63 = vsel %vm1039_vm5, %v1720_v61, %v1717_v62 }
 0x5a5   :  { %4072 = vmatmul.mubr.msk.f32.vlgmr.msra.gmra.mrb[16].mxu0 %vm194_vm0, %v1721_v63 }
 0x5a6   :  { %4093 = vmatprep.mubr.msk.f32.mxu0 %vm194_vm0, %v167_v24 }
 0x678   :  { %v4073_v0 = vpop.f32.mrb[16].mxu0 }
 0x679   :  { %v1806_v1 = vadd.f32 %v4073_v0, %v4878_v12  ;;  %v1794_v2 = vpop.f32.mrb[17].mxu0 }
 0x67a   :  { %v1805_v3 = vadd.f32 %v1794_v2, %v4862_v5  ;;  %v1854_v5 = vld [vmem:[#allocation12] sm:$0xff] }
 0x67b   :  { %v1810_v4 = vsel %vm194_vm0, %v1806_v1, 0.0  ;;  %v4249_v18 = vpack.c.bf16 %v1855_v17, %v1854_v5 }
 0x67c   :  { %1811 = vadd.xlane.f32.xlu1 %v1810_v4  ;;  %v1807_v6 = vsel %vm194_vm0, %v1805_v3, 0.0 }
 0x67d   :  { %1808 = vadd.xlane.f32.xlu0 %v1807_v6  ;;  %4250 = vmatprep.subr.bf16.mxu0 %v4249_v18 }
 0x67e   :  { %4252 = vmatpush3.bf16.msra.mxu0 %v4249_v18 }
 0x67f   :  { %4254 = vmatprep.subr.bf16.mxu0 %v4253_v23 }
 0x682   :  { %4256 = vmatpush3.bf16.msra.mxu0 %v4253_v23  ;;  %v180_v23 = vstv %s3772_s15 }
 0x683   :  { %4106 = vmatprep.subr.mxu0 %v4595_v16  ;;  %vm5189_vm7 = vcmp.lt.s32.totalorder %v4956_v36, %v180_v23 }
 0x685   :  { %4094 = vmatmul.mubr.msk.f32.vlgmr.msra.gmra.mrb[18].mxu0 %vm194_vm0, %v168_v27 }
 0x686   :  { %4108 = vmatprep.mubr.msk.f32.mxu0 %vm4596_vm1, %v4595_v16 }
 0x709   :  { %v1812_v7 = vpop.xlane.xlu1 %1811 }
 0x70a   :  { %v1815_v8 = vmul.f32 0.03125, %v1812_v7  ;;  %v1809_v19 = vpop.xlane.xlu0 %1808 }
 0x70b   :  { %v1814_v9 = vmul.f32 0.03125, %v1809_v19 }
 0x70c   :  { %v1817_v10 = vsub.f32 %v1806_v1, %v1815_v8  ;;  %v176_v1 = vstv %s175_s14 }
 0x70d   :  { %v1816_v11 = vsub.f32 %v1805_v3, %v1814_v9  ;;  %vm5172_vm6 = vcmp.lt.s32.totalorder %v4956_v36, %v176_v1 }
 0x70e   :  { %v1819_v15 = vmul.f32 %v1817_v10, %v1817_v10 }
 0x70f   :  { %v1818_v13 = vmul.f32 %v1816_v11, %v1816_v11 }
 0x710   :  { %v1823_v12 = vsel %vm194_vm0, %v1819_v15, 0.0 }
 0x711   :  { %v1820_v14 = vsel %vm194_vm0, %v1818_v13, 0.0 }
 0x712   :  { %1821 = vadd.xlane.f32.xlu0 %v1820_v14 }
 0x716   :  { %1824 = vadd.xlane.f32.xlu0 %v1823_v12 }
 0x758   :  { %v5105_v48 = vpop.f32.mrb[18].mxu0 }
 0x759   :  { %v5107_v49 = vpop.f32.mrb[19].mxu0 }
 0x75a   :  { %2191 = vrot.lane.b32.xlu1 %v5107_v49, %s4598_s29 }
 0x75e   :  { %2358 = vrot.lane.b32.xlu1 %v5107_v49, %s4597_s5 }
 0x79f   :  { %v1822_v32 = vpop.xlane.xlu0 %1821 }
 0x7a0   :  { %v1826_v20 = vmul.f32 0.03125, %v1822_v32 }
 0x7a2   :  { %v1828_v33 = vadd.f32 1e-05, %v1826_v20 }
 0x7a3   :  { %v1825_v34 = vpop.xlane.xlu0 %1824 }
 0x7a4   :  { %4343 = vrsqrt.f32 %v1828_v33  ;;  %v1827_v35 = vmul.f32 0.03125, %v1825_v34 }
 0x7a6   :  { %v1829_v37 = vadd.f32 1e-05, %v1827_v35 }
 0x7a8   :  { %4345 = vrsqrt.f32 %v1829_v37 }
 0x7ae   :  { %v4344_v38 = vpop.eup %4343 }
 0x7af   :  { %v1832_v40 = vmul.f32 %v4344_v38, %v1816_v11 }
 0x7b1   :  { %v1840_v42 = vmul.f32 %v3803_v39, %v1832_v40 }
 0x7b2   :  { %v4346_v43 = vpop.eup %4345 }
 0x7b3   :  { %v1833_v44 = vmul.f32 %v4346_v43, %v1817_v10  ;;  %v5095_v45 = vadd.f32 %v3804_v41, %v1840_v42 }
 0x7b5   :  { %v1841_v46 = vmul.f32 %v3803_v39, %v1833_v44  ;;  %4082 = vmatprep.mubr.msk.f32.mxu1 %vm194_vm0, %v5095_v45 }
 0x7b7   :  { %v5099_v47 = vadd.f32 %v3804_v41, %v1841_v46 }
 0x7b9   :  { %4083 = vmatmul.mubr.msk.f32.vlgmr.msra.gmra.mrb[20].mxu1 %vm194_vm0, %v5099_v47 }
 0x7ba   :  { %4098 = vmatprep.mubr.msk.f32.mxu1 %vm4596_vm1, %v4595_v16  ;;  %4097 = vmatpush3.xpose.msk.msra.mxu1 %vm357_vm2, %v5107_v49 }
 0x7bb   :  { %4101 = vmatprep.subr.mxu1 %v4595_v16 }
 0x7cc   :  { %v2192_v50 = vpop.permute.xlu1 %2191 }
 0x7cd   :  { %4107 = vmatpush3.xpose.msk.msra.mxu0 %vm357_vm2, %v2192_v50 }
 0x7ce   :  { %4116 = vmatprep.subr.mxu0 %v4595_v16 }
 0x7d0   :  { %v2359_v53 = vpop.permute.xlu1 %2358 }
 0x88c   :  { %v4084_v51 = vpop.f32.mrb[20].mxu1 }
 0x88d   :  { %v1934_v52 = vpop.f32.mrb[21].mxu1 }
 0x88e   :  { %2356 = vrot.lane.b32.xlu1 %v1934_v52, %s4597_s5  ;;  %2189 = vrot.lane.b32.xlu0 %v1934_v52, %s4598_s29 }
 0x88f   :  { %4099 = vmatmul.mubr.msk.f32.vlgmr.msra.gmra.mrb[22].mxu1 %vm357_vm2, %v1934_v52 }
 0x890   :  { %4103 = vmatprep.mubr.msk.f32.mxu1 %vm4596_vm1, %v4595_v16 }
 0x892   :  { %2523 = vrot.lane.b32.xlu1 %v1934_v52, %s4599_s21  ;;  %2525 = vrot.lane.b32.xlu0 %v5107_v49, %s4599_s21 }
 0x896   :  { %2870 = vrot.lane.b32.xlu1 %v4084_v51, %s4598_s29  ;;  %2872 = vrot.lane.b32.xlu0 %v5105_v48, %s4598_s29 }
 0x89a   :  { %3037 = vrot.lane.b32.xlu1 %v4084_v51, %s4597_s5  ;;  %3039 = vrot.lane.b32.xlu0 %v5105_v48, %s4597_s5  ;;  %s5397_s5 = sld [smem:[#allocation28_spill]] }
 0x89e   :  { %3204 = vrot.lane.b32.xlu1 %v4084_v51, %s4599_s21  ;;  %3206 = vrot.lane.b32.xlu0 %v5105_v48, %s4599_s21 }
 0x8a2   :  { %2280 = vrot.lane.b32.xlu1 %v5107_v49, %s4600_s22  ;;  %2113 = vrot.lane.b32.xlu0 %v5107_v49, %s4601_s23 }
 0x900   :  { %v2357_v54 = vpop.permute.xlu1 %2356  ;;  %v2190_v55 = vpop.permute.xlu0 %2189 }
 0x901   :  { %4109 = vmatmul.mubr.msk.f32.vlgmr.msra.gmra.mrb[20].mxu0 %vm357_vm2, %v2190_v55 }
 0x902   :  { %4117 = vmatpush3.xpose.msk.msra.mxu0 %vm357_vm2, %v2359_v53  ;;  %4118 = vmatprep.mubr.msk.f32.mxu0 %vm4596_vm1, %v4595_v16 }
 0x903   :  { %4126 = vmatprep.subr.mxu0 %v4595_v16 }
 0x904   :  { %v2526_v56 = vpop.permute.xlu0 %2525  ;;  %v2524_v57 = vpop.permute.xlu1 %2523 }
 0x905   :  { %4119 = vmatmul.mubr.msk.f32.vlgmr.msra.gmra.mrb[22].mxu0 %vm357_vm2, %v2357_v54 }
 0x906   :  { %4127 = vmatpush3.xpose.msk.msra.mxu0 %vm357_vm2, %v2526_v56  ;;  %4128 = vmatprep.mubr.msk.f32.mxu0 %vm4596_vm1, %v4595_v16 }
 0x907   :  { %4136 = vmatprep.subr.mxu0 %v4595_v16 }
 0x908   :  { %v2873_v58 = vpop.permute.xlu0 %2872  ;;  %v2871_v59 = vpop.permute.xlu1 %2870 }
 0x909   :  { %4129 = vmatmul.mubr.msk.f32.vlgmr.msra.gmra.mrb[24].mxu0 %vm357_vm2, %v2524_v57 }
 0x90a   :  { %4137 = vmatpush3.xpose.msk.msra.mxu0 %vm357_vm2, %v5105_v48  ;;  %4138 = vmatprep.mubr.msk.f32.mxu0 %vm4596_vm1, %v4595_v16 }
 0x90b   :  { %4146 = vmatprep.subr.mxu0 %v4595_v16 }
 0x90c   :  { %v3040_v60 = vpop.permute.xlu0 %3039  ;;  %v3038_v62 = vpop.permute.xlu1 %3037 }
 0x90d   :  { %4139 = vmatmul.mubr.msk.f32.vlgmr.msra.gmra.mrb[26].mxu0 %vm357_vm2, %v4084_v51 }
 0x90e   :  { %4147 = vmatpush3.xpose.msk.msra.mxu0 %vm357_vm2, %v2873_v58  ;;  %4148 = vmatprep.mubr.msk.f32.mxu0 %vm4596_vm1, %v4595_v16 }
 0x90f   :  { %4156 = vmatprep.subr.mxu0 %v4595_v16 }
 0x910   :  { %v3207_v61 = vpop.permute.xlu0 %3206  ;;  %v3205_v0 = vpop.permute.xlu1 %3204 }
 0x911   :  { %4149 = vmatmul.mubr.msk.f32.vlgmr.msra.gmra.mrb[28].mxu0 %vm357_vm2, %v2871_v59 }
 0x912   :  { %4157 = vmatpush3.xpose.msk.msra.mxu0 %vm357_vm2, %v3040_v60  ;;  %4158 = vmatprep.mubr.msk.f32.mxu0 %vm4596_vm1, %v4595_v16 }
 0x913   :  { %4166 = vmatprep.subr.mxu0 %v4595_v16 }
 0x914   :  { %v2114_v63 = vpop.permute.xlu0 %2113  ;;  %v2281_v55 = vpop.permute.xlu1 %2280 }
 0x915   :  { %4102 = vmatpush3.msra.mxu1 %v2114_v63  ;;  %4159 = vmatmul.mubr.msk.f32.vlgmr.msra.gmra.mrb[30].mxu0 %vm357_vm2, %v3038_v62 }
 0x916   :  { %4167 = vmatpush3.xpose.msk.msra.mxu0 %vm357_vm2, %v3207_v61  ;;  %4168 = vmatprep.mubr.msk.f32.mxu0 %vm4596_vm1, %v4595_v16 }
 0x917   :  { %4111 = vmatprep.subr.mxu1 %v4595_v16 }
 0x919   :  { %4169 = vmatmul.mubr.msk.f32.vlgmr.msra.gmra.mrb[32].mxu0 %vm357_vm2, %v3205_v0 }
 0x962   :  { %v2096_v2 = vpop.f32.mrb[22].mxu1 }
 0x963   :  { %v2100_v4 = vmul.f32 0.35355338, %v2096_v2  ;;  %v4100_v6 = vpop.f32.mrb[23].mxu1 }
 0x965   :  { %v2101_v7 = vsel %vm5172_vm6, %v2100_v4, -1000000.0 }
 0x966   :  { %v2102_v8 = vsel %vm357_vm2, %v2101_v7, -inf }
 0x967   :  { %2103 = vmax.xlane.f32.xlu0 %v2102_v8 }
 0x9d4   :  { %v2263_v19 = vpop.f32.mrb[20].mxu0 }
 0x9d5   :  { %v2267_v9 = vmul.f32 0.35355338, %v2263_v19  ;;  %v4110_v10 = vpop.f32.mrb[21].mxu0 }
 0x9d7   :  { %v2268_v11 = vsel %vm5172_vm6, %v2267_v9, -1000000.0 }
 0x9d8   :  { %v2430_v13 = vpop.f32.mrb[22].mxu0  ;;  %v2269_v14 = vsel %vm357_vm2, %v2268_v11, -inf }
 0x9d9   :  { %v2434_v15 = vmul.f32 0.35355338, %v2430_v13  ;;  %2270 = vmax.xlane.f32.xlu1 %v2269_v14  ;;  %v4120_v12 = vpop.f32.mrb[23].mxu0 }
 0x9db   :  { %v2435_v5 = vsel %vm5172_vm6, %v2434_v15, -1000000.0 }
 0x9dc   :  { %v2597_v17 = vpop.f32.mrb[24].mxu0  ;;  %v2436_v18 = vsel %vm357_vm2, %v2435_v5, -inf }
 0x9dd   :  { %v2601_v21 = vmul.f32 0.35355338, %v2597_v17  ;;  %v4130_v22 = vpop.f32.mrb[25].mxu0  ;;  %2437 = vmax.xlane.f32.xlu0 %v2436_v18 }
 0x9df   :  { %v2602_v24 = vsel %vm5172_vm6, %v2601_v21, -1000000.0 }
 0x9e0   :  { %v2777_v25 = vpop.f32.mrb[26].mxu0  ;;  %v2603_v26 = vsel %vm357_vm2, %v2602_v24, -inf }
 0x9e1   :  { %v2781_v28 = vmul.f32 0.35355338, %v2777_v25  ;;  %v4140_v29 = vpop.f32.mrb[27].mxu0  ;;  %2604 = vmax.xlane.f32.xlu0 %v2603_v26 }
 0x9e3   :  { %v2782_v30 = vsel %vm5189_vm7, %v2781_v28, -1000000.0 }
 0x9e4   :  { %v2944_v31 = vpop.f32.mrb[28].mxu0  ;;  %v2783_v32 = vsel %vm357_vm2, %v2782_v30, -inf }
 0x9e5   :  { %v2948_v20 = vmul.f32 0.35355338, %v2944_v31  ;;  %2784 = vmax.xlane.f32.xlu1 %v2783_v32  ;;  %v4150_v33 = vpop.f32.mrb[29].mxu0 }
 0x9e7   :  { %v2949_v34 = vsel %vm5189_vm7, %v2948_v20, -1000000.0 }
 0x9e8   :  { %v3111_v35 = vpop.f32.mrb[30].mxu0  ;;  %v2950_v36 = vsel %vm357_vm2, %v2949_v34, -inf }
 0x9e9   :  { %v3115_v37 = vmul.f32 0.35355338, %v3111_v35  ;;  %v4160_v38 = vpop.f32.mrb[31].mxu0  ;;  %2951 = vmax.xlane.f32.xlu0 %v2950_v36 }
 0x9eb   :  { %v3116_v39 = vsel %vm5189_vm7, %v3115_v37, -1000000.0 }
 0x9ec   :  { %v3278_v40 = vpop.f32.mrb[32].mxu0  ;;  %v3117_v41 = vsel %vm357_vm2, %v3116_v39, -inf }
 0x9ed   :  { %v3282_v42 = vmul.f32 0.35355338, %v3278_v40  ;;  %3118 = vmax.xlane.f32.xlu1 %v3117_v41  ;;  %v4170_v43 = vpop.f32.mrb[33].mxu0 }
 0x9ef   :  { %v3283_v44 = vsel %vm5189_vm7, %v3282_v42, -1000000.0 }
 0x9f0   :  { %v3284_v46 = vsel %vm357_vm2, %v3283_v44, -inf }
 0x9f1   :  { %3285 = vmax.xlane.f32.xlu0 %v3284_v46 }
 0x9f4   :  { %v2104_v50 = vpop.xlane.xlu0 %2103 }
 0x9f5   :  { %v2105_v51 = vsub.f32 %v2101_v7, %v2104_v50 }
 0x9f7   :  { %v2106_v52 = vmul.f32 1.442695, %v2105_v51 }
 0x9f9   :  { %4347 = vpow2.f32 %v2106_v52 }
 0x9fe   :  { %2614 = vrot.lane.b32.xlu1 %v5107_v49, %s4602_s7 }
 0xa03   :  { %v4348_v53 = vpop.eup %4347 }
 0xa04   :  { %v2108_v54 = vsel %vm357_vm2, %v4348_v53, 0.0 }
 0xa07   :  { %2447 = vrot.lane.b32.xlu0 %v5107_v49, %s4603_s13 }
 0xa22   :  { %2109 = vadd.xlane.f32.xlu1 %v2108_v54 }
 0xa66   :  { %v2271_v56 = vpop.xlane.xlu1 %2270 }
 0xa67   :  { %v2272_v57 = vsub.f32 %v2268_v11, %v2271_v56 }
 0xa69   :  { %v2273_v58 = vmul.f32 1.442695, %v2272_v57 }
 0xa6a   :  { %v2438_v59 = vpop.xlane.xlu0 %2437 }
 0xa6b   :  { %4349 = vpow2.f32 %v2273_v58  ;;  %v2439_v60 = vsub.f32 %v2435_v5, %v2438_v59 }
 0xa6d   :  { %v2440_v61 = vmul.f32 1.442695, %v2439_v60 }
 0xa6e   :  { %v2605_v62 = vpop.xlane.xlu0 %2604 }
 0xa6f   :  { %4351 = vpow2.f32 %v2440_v61  ;;  %v2606_v63 = vsub.f32 %v2602_v24, %v2605_v62 }
 0xa71   :  { %v2607_v49 = vmul.f32 1.442695, %v2606_v63 }
 0xa72   :  { %v2785_v7 = vpop.xlane.xlu1 %2784 }
 0xa73   :  { %4353 = vpow2.f32 %v2607_v49  ;;  %v2786_v8 = vsub.f32 %v2782_v30, %v2785_v7  ;;  %v1861_v7 = vld [vmem:[#allocation13 + $0x18] sm:$0xff] }
 0xa75   :  { %v4350_v0 = vpop.eup %4349  ;;  %v2787_v11 = vmul.f32 1.442695, %v2786_v8 }
 0xa76   :  { %v2275_v1 = vsel %vm357_vm2, %v4350_v0, 0.0  ;;  %v2952_v19 = vpop.xlane.xlu0 %2951 }
 0xa77   :  { %2276 = vadd.xlane.f32.xlu0 %v2275_v1  ;;  %v2953_v10 = vsub.f32 %v2949_v34, %v2952_v19  ;;  %4355 = vpow2.f32 %v2787_v11 }
 0xa79   :  { %v4352_v2 = vpop.eup %4351  ;;  %v2954_v15 = vmul.f32 1.442695, %v2953_v10 }
 0xa7a   :  { %v2442_v3 = vsel %vm357_vm2, %v4352_v2, 0.0  ;;  %v3119_v9 = vpop.xlane.xlu1 %3118 }
 0xa7b   :  { %2443 = vadd.xlane.f32.xlu1 %v2442_v3  ;;  %v3120_v13 = vsub.f32 %v3116_v39, %v3119_v9  ;;  %4357 = vpow2.f32 %v2954_v15  ;;  %v1858_v3 = vld [vmem:[#allocation13] sm:$0xff] }
 0xa7d   :  { %v5212_v4 = vpop.eup %4353  ;;  %v3121_v12 = vmul.f32 1.442695, %v3120_v13 }
 0xa7e   :  { %v2609_v6 = vsel %vm357_vm2, %v5212_v4, 0.0  ;;  %v3286_v14 = vpop.xlane.xlu0 %3285  ;;  %v2615_v18 = vpop.permute.xlu1 %2614 }
 0xa7f   :  { %2610 = vadd.xlane.f32.xlu0 %v2609_v6  ;;  %v3287_v5 = vsub.f32 %v3283_v44, %v3286_v14  ;;  %4359 = vpow2.f32 %v3121_v12  ;;  %v1860_v6 = vld [vmem:[#allocation13 + $0x10] sm:$0xff] }
 0xa80   :  { %v4261_v8 = vpack.c.bf16 %v1861_v7, %v1860_v6 }
 0xa81   :  { %v3288_v17 = vmul.f32 1.442695, %v3287_v5  ;;  %v4356_v21 = vpop.eup %4355 }
 0xa82   :  { %v2789_v24 = vsel %vm357_vm2, %v4356_v21, 0.0  ;;  %v2448_v32 = vpop.permute.xlu0 %2447 }
 0xa83   :  { %4361 = vpow2.f32 %v3288_v17 }
 0xa85   :  { %v5220_v22 = vpop.eup %4357 }
 0xa86   :  { %v2956_v27 = vsel %vm357_vm2, %v5220_v22, 0.0 }
 0xa89   :  { %v5223_v25 = vpop.eup %4359 }
 0xa8a   :  { %v3123_v26 = vsel %vm357_vm2, %v5223_v25, 0.0 }
 0xa8c   :  { %2961 = vrot.lane.b32.xlu1 %v5105_v48, %s4600_s22  ;;  %s4606_s22 = smov [#allocation16]  }
 0xa8d   :  { %v5229_v28 = vpop.eup %4361 }
 0xa8e   :  { %v3290_v29 = vsel %vm357_vm2, %v5229_v28, 0.0 }
 0xa95   :  { %2794 = vrot.lane.b32.xlu0 %v5105_v48, %s4601_s23  ;;  %s3757_s23 = sshll.u32 %s4606_s22, 4  ;;  %s3758_s23 = int_to_ptr.vmem [resolvable:$true] %s3757_s23 }
 0xa96   :  { %p4556_p4 = scmp.lt.s32.totalorder %s3758_s23, %s3758_s23 }
 0xaaf   :  { %v2110_v23 = vpop.xlane.xlu1 %2109 }
 0xab0   :  { %4363 = vrcp.f32 %v2110_v23  ;;  %2790 = vadd.xlane.f32.xlu1 %v2789_v24 }
 0xab4   :  { %3124 = vadd.xlane.f32.xlu1 %v3123_v26  ;;  %2957 = vadd.xlane.f32.xlu0 %v2956_v27 }
 0xab8   :  { %3291 = vadd.xlane.f32.xlu1 %v3290_v29 }
 0xaba   :  { %v4364_v30 = vpop.eup %4363 }
 0xabb   :  { %v2112_v31 = vmul.f32 %v4364_v30, %v4348_v53 }
 0xabd   :  { %4104 = vmatmul.mubr.msk.f32.vlgmr.msra.gmra.mrb[24].mxu1 %vm357_vm2, %v2112_v31 }
 0xabe   :  { %4112 = vmatpush3.msra.mxu1 %v2281_v55  ;;  %4113 = vmatprep.mubr.msk.f32.mxu1 %vm4596_vm1, %v4595_v16 }
 0xabf   :  { %4121 = vmatprep.subr.mxu1 %v4595_v16 }
 0xac9   :  { %3295 = vrot.lane.b32.xlu1 %v5105_v48, %s4602_s7  ;;  %s4551_s7 = scalar_lea.vmem %s3758_s23, 256 }
 0xaca   :  { %3128 = vrot.lane.b32.xlu0 %v5105_v48, %s4603_s13  ;;  %p4552_p3 = scmp.ne.s32.totalorder %s3758_s23, %s4551_s7  ;;  %p4557_p5 = scmp.lt.s32.totalorder %s4551_s7, %s4551_s7 }
 0xacc   :  { %p4558_p6 = por %p4557_p5, %p4556_p4 }
 0xace   :  { %p4559_p7 = pnand %p4558_p6, %p4552_p3 }
 0xb04   :  { %v2277_v20 = vpop.xlane.xlu0 %2276 }
 0xb05   :  { %4365 = vrcp.f32 %v2277_v20 }
 0xb08   :  { %v2444_v33 = vpop.xlane.xlu1 %2443 }
 0xb09   :  { %4367 = vrcp.f32 %v2444_v33 }
 0xb0c   :  { %v2611_v34 = vpop.xlane.xlu0 %2610  ;;  %v2962_v41 = vpop.permute.xlu1 %2961 }
 0xb0d   :  { %4369 = vrcp.f32 %v2611_v34 }
 0xb0f   :  { %v4366_v35 = vpop.eup %4365 }
 0xb10   :  { %v2279_v36 = vmul.f32 %v4366_v35, %v4350_v0  ;;  %v2795_v40 = vpop.permute.xlu0 %2794 }
 0xb12   :  { %4114 = vmatmul.mubr.msk.f32.vlgmr.msra.gmra.mrb[26].mxu1 %vm357_vm2, %v2279_v36 }
 0xb13   :  { %v4368_v37 = vpop.eup %4367  ;;  %4122 = vmatpush3.msra.mxu1 %v2448_v32  ;;  %4123 = vmatprep.mubr.msk.f32.mxu1 %vm4596_vm1, %v4595_v16 }
 0xb14   :  { %v2446_v38 = vmul.f32 %v4368_v37, %v4352_v2  ;;  %4131 = vmatprep.subr.mxu1 %v4595_v16 }
 0xb16   :  { %4124 = vmatmul.mubr.msk.f32.vlgmr.msra.gmra.mrb[28].mxu1 %vm357_vm2, %v2446_v38 }
 0xb17   :  { %v4370_v48 = vpop.eup %4369  ;;  %4132 = vmatpush3.msra.mxu1 %v2615_v18  ;;  %4133 = vmatprep.mubr.msk.f32.mxu1 %vm4596_vm1, %v4595_v16 }
 0xb18   :  { %v2613_v39 = vmul.f32 %v4370_v48, %v5212_v4  ;;  %4141 = vmatprep.subr.mxu1 %v4595_v16 }
 0xb1a   :  { %4134 = vmatmul.mubr.msk.f32.vlgmr.msra.gmra.mrb[30].mxu1 %vm357_vm2, %v2613_v39 }
 0xb1b   :  { %4142 = vmatpush3.msra.mxu1 %v2795_v40  ;;  %4143 = vmatprep.mubr.msk.f32.mxu1 %vm4596_vm1, %v4595_v16 }
 0xb1c   :  { %4151 = vmatprep.subr.mxu1 %v4595_v16 }
 0xb3d   :  { %v2791_v42 = vpop.xlane.xlu1 %2790 }
 0xb3e   :  { %4371 = vrcp.f32 %v2791_v42 }
 0xb41   :  { %v3125_v43 = vpop.xlane.xlu1 %3124  ;;  %v2958_v44 = vpop.xlane.xlu0 %2957 }
 0xb42   :  { %4373 = vrcp.f32 %v2958_v44 }
 0xb43   :  { %4375 = vrcp.f32 %v3125_v43  ;;  %v3514_v43 = vld [vmem:[#allocation15 + $0x8] sm:$0xff] }
 0xb45   :  { %v3292_v46 = vpop.xlane.xlu1 %3291  ;;  %v3129_v55 = vpop.permute.xlu0 %3128 }
 0xb46   :  { %4377 = vrcp.f32 %v3292_v46  ;;  %v3515_v46 = vld [vmem:[#allocation15 + $0x10] sm:$0xff] }
 0xb48   :  { %v4372_v50 = vpop.eup %4371 }
 0xb49   :  { %v2793_v51 = vmul.f32 %v4372_v50, %v4356_v21  ;;  %v3296_v58 = vpop.permute.xlu1 %3295  ;;  %v3516_v50 = vld [vmem:[#allocation15 + $0x18] sm:$0xff] }
 0xb4b   :  { %4144 = vmatmul.mubr.msk.f32.vlgmr.msra.gmra.mrb[32].mxu1 %vm357_vm2, %v2793_v51  ;;  %v4269_v51 = vpack.c.bf16 %v3516_v50, %v3515_v46  ;;  %v3843_v46 = vld [vmem:[%s5372_s18] ss:$0 sm:$0xff] }
 0xb4c   :  { %4152 = vmatpush3.msra.mxu1 %v2962_v41  ;;  %4153 = vmatprep.mubr.msk.f32.mxu1 %vm4596_vm1, %v4595_v16  ;;  %v4374_v52 = vpop.eup %4373 }
 0xb4d   :  { %4161 = vmatprep.subr.mxu1 %v4595_v16  ;;  %v2960_v53 = vmul.f32 %v4374_v52, %v5220_v22  ;;  %v4376_v54 = vpop.eup %4375  ;;  %v3607_v52 = vld [vmem:[%s5366_s12] sm:$0xff] }
 0xb4e   :  { %v3127_v56 = vmul.f32 %v4376_v54, %v5223_v25  ;;  %v3609_v54 = vld [vmem:[%s5366_s12 + $0x10] sm:$0xff] }
 0xb4f   :  { %4154 = vmatmul.mubr.msk.f32.vlgmr.msra.gmra.mrb[34].mxu1 %vm357_vm2, %v2960_v53  ;;  %v3608_v53 = vld [vmem:[%s5366_s12 + $0x8] sm:$0xff] }
 0xb50   :  { %4162 = vmatpush3.msra.mxu1 %v3129_v55  ;;  %4163 = vmatprep.mubr.msk.f32.mxu1 %vm4596_vm1, %v4595_v16  ;;  %v4378_v57 = vpop.eup %4377  ;;  %v4273_v55 = vpack.c.bf16 %v3608_v53, %v3607_v52  ;;  %v3844_v53 = vld [vmem:[%s5373_s19] ss:$0 sm:$0xff] }
 0xb51   :  { %4171 = vmatprep.subr.mxu1 %v4595_v16  ;;  %v3294_v59 = vmul.f32 %v4378_v57, %v5229_v28 }
 0xb53   :  { %4164 = vmatmul.mubr.msk.f32.vlgmr.msra.gmra.mrb[36].mxu1 %vm357_vm2, %v3127_v56  ;;  %v3610_v56 = vld [vmem:[%s5366_s12 + $0x18] sm:$0xff] }
 0xb54   :  { %4172 = vmatpush3.msra.mxu1 %v3296_v58  ;;  %4173 = vmatprep.mubr.msk.f32.mxu1 %vm4596_vm1, %v4595_v16  ;;  %v1859_v16 = vld [vmem:[#allocation13 + $0x8] sm:$0xff]  ;;  %v4277_v57 = vpack.c.bf16 %v3610_v56, %v3609_v54  ;;  %v3611_v58 = vld [vmem:[%s5366_s12 + $0x20] sm:$0xff] }
 0xb55   :  { %v4257_v4 = vpack.c.bf16 %v1859_v16, %v1858_v3  ;;  %v3835_v3 = vld [vmem:[%s5370_s16] ss:$0 sm:$0xff] }
 0xb57   :  { %4174 = vmatmul.mubr.msk.f32.vlgmr.msra.gmra.mrb[38].mxu1 %vm357_vm2, %v3294_v59  ;;  %4258 = vmatprep.subr.bf16.mxu0 %v4257_v4  ;;  %v3612_v59 = vld [vmem:[%s5366_s12 + $0x28] sm:$0xff] }
 0xb58   :  { %4260 = vmatpush3.bf16.msra.mxu0 %v4257_v4  ;;  %v3836_v4 = vld [vmem:[%s5371_s17] ss:$0 sm:$0xff] }
 0xb59   :  { %4262 = vmatprep.subr.bf16.mxu0 %v4261_v8 }
 0xb5c   :  { %4264 = vmatpush3.bf16.msra.mxu0 %v4261_v8 }
 0xb5d   :  { %4274 = vmatprep.subr.bf16.mxu0 %v4273_v55 }
 0xb90   :  { %v2185_v60 = vpop.f32.mrb[24].mxu1 }
 0xb91   :  { %v4105_v61 = vpop.f32.mrb[25].mxu1 }
 0xbe5   :  { %v2352_v62 = vpop.f32.mrb[26].mxu1 }
 0xbe6   :  { %2691 = vrot.lane.b32.xlu0 %v2352_v62, %s4589_s27  ;;  %v4115_v63 = vpop.f32.mrb[27].mxu1 }
 0xbe9   :  { %v2519_v49 = vpop.f32.mrb[28].mxu1 }
 0xbea   :  { %2695 = vrot.lane.b32.xlu1 %v2519_v49, %s4604_s24  ;;  %v4125_v0 = vpop.f32.mrb[29].mxu1 }
 0xbed   :  { %v2686_v1 = vpop.f32.mrb[30].mxu1 }
 0xbee   :  { %2699 = vrot.lane.b32.xlu1 %v2686_v1, %s4605_s30  ;;  %v4135_v2 = vpop.f32.mrb[31].mxu1 }
 0xc1e   :  { %v2866_v19 = vpop.f32.mrb[32].mxu1 }
 0xc1f   :  { %v4145_v9 = vpop.f32.mrb[33].mxu1 }
 0xc22   :  { %v3033_v10 = vpop.f32.mrb[34].mxu1 }
 0xc23   :  { %3372 = vrot.lane.b32.xlu0 %v3033_v10, %s4589_s27  ;;  %v4155_v11 = vpop.f32.mrb[35].mxu1 }
 0xc24   :  { %v3613_v11 = vld [vmem:[%s5366_s12 + $0x30] sm:$0xff] }
 0xc26   :  { %v3200_v13 = vpop.f32.mrb[36].mxu1 }
 0xc27   :  { %3376 = vrot.lane.b32.xlu0 %v3200_v13, %s4604_s24  ;;  %v4165_v14 = vpop.f32.mrb[37].mxu1  ;;  %v3614_v13 = vld [vmem:[%s5366_s12 + $0x38] sm:$0xff] }
 0xc28   :  { %v4285_v14 = vpack.c.bf16 %v3614_v13, %v3613_v11 }
 0xc2a   :  { %v3367_v15 = vpop.f32.mrb[38].mxu1 }
 0xc2b   :  { %3380 = vrot.lane.b32.xlu1 %v3367_v15, %s4605_s30  ;;  %v4175_v12 = vpop.f32.mrb[39].mxu1  ;;  %v3837_v15 = vld [vmem:[%s5365_s11] ss:$0 sm:$0xff] }
 0xc58   :  { %v2692_v5 = vpop.permute.xlu0 %2691 }
 0xc59   :  { %v2702_v18 = vsel %vm357_vm2, %v2185_v60, %v2692_v5  ;;  %v4281_v60 = vpack.c.bf16 %v3612_v59, %v3611_v58 }
 0xc5c   :  { %v2696_v17 = vpop.permute.xlu1 %2695 }
 0xc5d   :  { %v2703_v21 = vsel %vm1037_vm4, %v2702_v18, %v2696_v17 }
 0xc60   :  { %v2700_v22 = vpop.permute.xlu1 %2699 }
 0xc61   :  { %v2704_v23 = vsel %vm1039_vm5, %v2703_v21, %v2700_v22 }
 0xc62   :  { %4184 = vmatprep.mubr.msk.f32.mxu0 %vm194_vm0, %v2704_v23  ;;  %v3840_v23 = vld [vmem:[%s5397_s5] ss:$0 sm:$0xff] }
 0xc95   :  { %v3373_v24 = vpop.permute.xlu0 %3372 }
 0xc96   :  { %v3383_v26 = vsel %vm357_vm2, %v2866_v19, %v3373_v24 }
 0xc99   :  { %v3377_v25 = vpop.permute.xlu0 %3376 }
 0xc9a   :  { %v3384_v27 = vsel %vm1037_vm4, %v3383_v26, %v3377_v25 }
 0xc9d   :  { %v3381_v28 = vpop.permute.xlu1 %3380 }
 0xc9e   :  { %v3385_v29 = vsel %vm1039_vm5, %v3384_v27, %v3381_v28 }
 0xc9f   :  { %4185 = vmatmul.mubr.msk.f32.vlgmr.msra.gmra.mrb[34].mxu0 %vm194_vm0, %v3385_v29 }
 0xca0   :  { %4276 = vmatpush3.bf16.msra.mxu0 %v4273_v55 }
 0xca1   :  { %4278 = vmatprep.subr.bf16.mxu0 %v4277_v57 }
 0xca4   :  { %4280 = vmatpush3.bf16.msra.mxu0 %v4277_v57 }
 0xca5   :  { %4282 = vmatprep.subr.bf16.mxu0 %v4281_v60 }
 0xca8   :  { %4284 = vmatpush3.bf16.msra.mxu0 %v4281_v60 }
 0xca9   :  { %4286 = vmatprep.subr.bf16.mxu0 %v4285_v14 }
 0xcac   :  { %4288 = vmatpush3.bf16.msra.mxu0 %v4285_v14 }
 0xd72   :  { %v4186_v30 = vpop.f32.mrb[34].mxu0 }
 0xd73   :  { %v3470_v31 = vadd.f32 %v4186_v30, %v5099_v47  ;;  %v3458_v32 = vpop.f32.mrb[35].mxu0 }
 0xd74   :  { %v3469_v20 = vadd.f32 %v3458_v32, %v5095_v45  ;;  %v3513_v45 = vld [vmem:[#allocation15] sm:$0xff] }
 0xd75   :  { %v3474_v33 = vsel %vm194_vm0, %v3470_v31, 0.0  ;;  %v4265_v44 = vpack.c.bf16 %v3514_v43, %v3513_v45 }
 0xd76   :  { %3475 = vadd.xlane.f32.xlu1 %v3474_v33  ;;  %v3471_v34 = vsel %vm194_vm0, %v3469_v20, 0.0 }
 0xd77   :  { %3472 = vadd.xlane.f32.xlu0 %v3471_v34  ;;  %4266 = vmatprep.subr.bf16.mxu1 %v4265_v44 }
 0xd78   :  { %4268 = vmatpush3.bf16.msra.mxu1 %v4265_v44 }
 0xd79   :  { %4270 = vmatprep.subr.bf16.mxu1 %v4269_v51 }
 0xd7c   :  { %4272 = vmatpush3.bf16.msra.mxu1 %v4269_v51 }
 0xe03   :  { %v3476_v35 = vpop.xlane.xlu1 %3475 }
 0xe04   :  { %v3478_v36 = vmul.f32 0.03125, %v3476_v35  ;;  %v3473_v37 = vpop.xlane.xlu0 %3472 }
 0xe05   :  { %v3477_v38 = vmul.f32 0.03125, %v3473_v37 }
 0xe06   :  { %v3480_v48 = vsub.f32 %v3470_v31, %v3478_v36 }
 0xe07   :  { %v3479_v39 = vsub.f32 %v3469_v20, %v3477_v38 }
 0xe08   :  { %v3482_v42 = vmul.f32 %v3480_v48, %v3480_v48 }
 0xe09   :  { %v3481_v40 = vmul.f32 %v3479_v39, %v3479_v39 }
 0xe0a   :  { %v3486_v47 = vsel %vm194_vm0, %v3482_v42, 0.0 }
 0xe0b   :  { %v3483_v41 = vsel %vm194_vm0, %v3481_v40, 0.0 }
 0xe0c   :  { %3484 = vadd.xlane.f32.xlu0 %v3483_v41 }
 0xe10   :  { %3487 = vadd.xlane.f32.xlu0 %v3486_v47 }
 0xe99   :  { %v3485_v61 = vpop.xlane.xlu0 %3484 }
 0xe9a   :  { %v3489_v62 = vmul.f32 0.03125, %v3485_v61 }
 0xe9c   :  { %v3491_v63 = vadd.f32 1e-05, %v3489_v62 }
 0xe9d   :  { %v3488_v49 = vpop.xlane.xlu0 %3487 }
 0xe9e   :  { %4379 = vrsqrt.f32 %v3491_v63  ;;  %v3490_v0 = vmul.f32 0.03125, %v3488_v49 }
 0xea0   :  { %v3492_v1 = vadd.f32 1e-05, %v3490_v0 }
 0xea2   :  { %4381 = vrsqrt.f32 %v3492_v1 }
 0xea8   :  { %v4380_v2 = vpop.eup %4379 }
 0xea9   :  { %v3495_v16 = vmul.f32 %v4380_v2, %v3479_v39 }
 0xeab   :  { %v3503_v6 = vmul.f32 %v3835_v3, %v3495_v16 }
 0xeac   :  { %v4382_v7 = vpop.eup %4381 }
 0xead   :  { %v3496_v8 = vmul.f32 %v4382_v7, %v3480_v48  ;;  %v3511_v19 = vadd.f32 %v3836_v4, %v3503_v6 }
 0xeaf   :  { %v3504_v9 = vmul.f32 %v3835_v3, %v3496_v8  ;;  %4195 = vmatprep.mubr.msk.f32.mxu1 %vm194_vm0, %v3511_v19 }
 0xeb1   :  { %v3512_v10 = vadd.f32 %v3836_v4, %v3504_v9 }
 0xeb3   :  { %4196 = vmatmul.mubr.msk.f32.vlgmr.msra.gmra.mrb[40].mxu1 %vm194_vm0, %v3512_v10 }
 0xf86   :  { %v4197_v12 = vpop.f32.mrb[40].mxu1 }
 0xf87   :  { %v3602_v5 = vadd.f32 %v4197_v12, %v3837_v15  ;;  %v3596_v17 = vpop.f32.mrb[41].mxu1 }
 0xf88   :  { %v3597_v18 = vadd.f32 %v3837_v15, %v3596_v17 }
 0xf89   :  { %v3606_v22 = vmax.f32 %v3602_v5, 0.0 }
 0xf8a   :  { %v3605_v21 = vmax.f32 %v3597_v18, 0.0 }
 0xf8c   :  { %4214 = vmatprep.mubr.msk.f32.mxu0 %vm3622_vm8, %v3605_v21 }
 0xf8d   :  { %4215 = vmatmul.mubr.msk.f32.vlgmr.msra.gmra.mrb[36].mxu0 %vm3622_vm8, %v3606_v22 }
0x1060   :  { %v4216_v24 = vpop.f32.mrb[36].mxu0 }
0x1061   :  { %v3701_v25 = vadd.f32 %v4216_v24, %v3840_v23  ;;  %v3695_v26 = vpop.f32.mrb[37].mxu0 }
0x1062   :  { %v3696_v27 = vadd.f32 %v3840_v23, %v3695_v26 }
0x1063   :  { %v3707_v28 = vadd.f32 %v3701_v25, %v3512_v10 }
0x1064   :  { %v3706_v29 = vadd.f32 %v3696_v27, %v3511_v19 }
0x1065   :  { %v3711_v30 = vsel %vm194_vm0, %v3707_v28, 0.0 }
0x1066   :  { %3712 = vadd.xlane.f32.xlu0 %v3711_v30  ;;  %v3708_v31 = vsel %vm194_vm0, %v3706_v29, 0.0 }
0x1067   :  { %3709 = vadd.xlane.f32.xlu1 %v3708_v31 }
0x10f3   :  { %v3713_v32 = vpop.xlane.xlu0 %3712 }
0x10f4   :  { %v3715_v20 = vmul.f32 0.03125, %v3713_v32  ;;  %v3710_v33 = vpop.xlane.xlu1 %3709 }
0x10f5   :  { %v3714_v34 = vmul.f32 0.03125, %v3710_v33 }
0x10f6   :  { %v3717_v35 = vsub.f32 %v3707_v28, %v3715_v20 }
0x10f7   :  { %v3716_v36 = vsub.f32 %v3706_v29, %v3714_v34 }
0x10f8   :  { %v3719_v37 = vmul.f32 %v3717_v35, %v3717_v35 }
0x10f9   :  { %v3718_v38 = vmul.f32 %v3716_v36, %v3716_v36 }
0x10fa   :  { %v3723_v48 = vsel %vm194_vm0, %v3719_v37, 0.0 }
0x10fb   :  { %3724 = vadd.xlane.f32.xlu0 %v3723_v48  ;;  %v3720_v39 = vsel %vm194_vm0, %v3718_v38, 0.0 }
0x10fc   :  { %3721 = vadd.xlane.f32.xlu1 %v3720_v39 }
0x1188   :  { %v3725_v40 = vpop.xlane.xlu0 %3724 }
0x1189   :  { %v3727_v41 = vmul.f32 0.03125, %v3725_v40  ;;  %v3722_v42 = vpop.xlane.xlu1 %3721 }
0x118a   :  { %v3726_v47 = vmul.f32 0.03125, %v3722_v42 }
0x118b   :  { %v3729_v45 = vadd.f32 1e-05, %v3727_v41 }
0x118c   :  { %v3728_v43 = vadd.f32 1e-05, %v3726_v47 }
0x118d   :  { %4383 = vrsqrt.f32 %v3729_v45 }
0x118e   :  { %4385 = vrsqrt.f32 %v3728_v43 }
0x1197   :  { %v4384_v44 = vpop.eup %4383 }
0x1198   :  { %v4386_v50 = vpop.eup %4385  ;;  %v3733_v51 = vmul.f32 %v4384_v44, %v3717_v35 }
0x1199   :  { %v3732_v52 = vmul.f32 %v4386_v50, %v3716_v36 }
0x119a   :  { %v3741_v54 = vmul.f32 %v3843_v46, %v3733_v51 }
0x119b   :  { %v3740_v55 = vmul.f32 %v3843_v46, %v3732_v52 }
0x119c   :  { %v3749_v56 = vadd.f32 %v3844_v53, %v3741_v54 }
0x119d   :  { %v3748_v57 = vadd.f32 %v3844_v53, %v3740_v55 }
0x119e   :  { %3751 = vst.msk [vmem:[#allocation16 + $0x8] sm:$0xff] %vm194_vm0, %v3749_v56 }
0x119f   :  { %3750 = vst.msk [vmem:[#allocation16] sm:$0xff] %vm194_vm0, %v3748_v57 }
0x11a0   :  { %4562 = shalt.err (!%p4559_p7)
}
0x11a1   :  { %s4563_s13 = scalar_lea.hbm %s5374_s20, 256 }
0x11a2   :  { %p4564_p8 = scmp.ne.s32.totalorder %s5374_s20, %s4563_s13  ;;  %p4567_p9 = scmp.lt.u32.totalorder %s4563_s13, %s5374_s20 }
0x11a4   :  { %p4569_p10 = pnand %p4567_p9, %p4564_p8 }
0x11a6   :  { %4572 = shalt.err (!%p4569_p10)
}
0x11a7   :  { %3763 = dma.vmem_to_hbm [thread:$0]  %s3758_s23, 256, %s5374_s20, [#allocation6], %s4588_s26, %s4588_s26, %s4589_s27  }
0x11a8   :  { %4583 = dma.done.wait [#allocation6], 256  }
0x11a9   :  { %4584 = vsyncadd [#allocation6], 4294967040 }
0x11aa   :  { %3767 = vsyncpa [#allocation5], 1 }
0x11ab   :  { %3768 = vsyncpa [#allocation8], 1 }
0x11ac   :  { %3769 = vsyncpa [#allocation11], 1 }
0x11ad   :  { %3770 = vsyncpa [#allocation14], 1 }
0x11ae   :  { %3771 = vsyncpa [#allocation6], 1 }

</bundles_post_ra>
